<compile_context>
chip_gen: v5e
topology: v5e:2x2
jax: 0.10.0
libtpu: 0.0.40
codegen_flags: <defaults>
</compile_context>

<pallas_src>
import functools

import jax
import jax.numpy as jnp
import numpy as np
from jax.experimental import pallas as pl
from jax.experimental.pallas import tpu as pltpu

LANE = 128       # Cout / K padding target (lane width)
ROW_ALIGN = 16   # row (sublane) alignment for bf16 blocks
TILE_M = 512     # max row tile for the matmul kernels


def _round_up(x, m):
    return ((x + m - 1) // m) * m


def _cdiv(a, b):
    return (a + b - 1) // b


def _vmem_limit(block_bytes):
    # Headroom over the double-buffered working set, clamped to 32 MiB so it
    # is safe on v5e/v6e (128 MiB) and v7x (64 MiB) alike.
    return int(min(max(3 * block_bytes + (4 << 20), 8 << 20), 32 << 20))


def _pick_row_tile(M, max_tile=TILE_M, align=ROW_ALIGN):
    """Row tile such that (a) padding waste stays small, (b) the 'parallel'
    grid has >= 2 steps whenever M allows (both v7x TensorCores busy), and
    (c) the tile never exceeds max_tile."""
    ntiles = _cdiv(M, max_tile)
    if M >= 2 * align:
        ntiles = max(ntiles, 2)
    tm = _round_up(_cdiv(M, ntiles), align)
    grid_n = _cdiv(M, tm)
    return tm, grid_n


# ---------------------------------------------------------------------------
# Pallas kernels
# ---------------------------------------------------------------------------
def _conv_pool_kernel(x0_ref, x1_ref, x2_ref, x3_ref, w_ref, b_ref, o_ref):
    """Fused conv(matmul) + 2x2 max-pool + bias + ReLU for one row tile.

    x0..x3 are im2col slabs of the four pooling-window corners.  Running max
    over the four dots keeps at most two (tm, 128) f32 intermediates live.
    Since bias-add and ReLU are monotonic:
        max_i relu(x_i@w + b) = relu(max_i(x_i@w) + b).
    """
    w = w_ref[...]
    acc = jnp.dot(x0_ref[...], w, preferred_element_type=jnp.float32)
    acc = jnp.maximum(acc, jnp.dot(x1_ref[...], w,
                                   preferred_element_type=jnp.float32))
    acc = jnp.maximum(acc, jnp.dot(x2_ref[...], w,
                                   preferred_element_type=jnp.float32))
    acc = jnp.maximum(acc, jnp.dot(x3_ref[...], w,
                                   preferred_element_type=jnp.float32))
    o_ref[...] = jnp.maximum(acc + b_ref[...], 0.0).astype(o_ref.dtype)


def conv_pool_matmul(corners, w_mat, b_row):
    """corners: 4 x (M, Kp) bf16; w_mat: (Kp, Cp) bf16; b_row: (1, Cp) f32."""
    M, Kp = corners[0].shape
    Cp = w_mat.shape[1]
    tm, grid_n = _pick_row_tile(M)
    Mp = tm * grid_n
    if Mp != M:
        corners = [jnp.pad(c, ((0, Mp - M), (0, 0))) for c in corners]

    block_bytes = 4 * tm * Kp * 2 + Kp * Cp * 2 + Cp * 4 + tm * Cp * 2
    flops = 2 * 4 * Mp * Kp * Cp
    bytes_accessed = 4 * Mp * Kp * 2 + Kp * Cp * 2 + Cp * 4 + Mp * Cp * 2

    out = pl.pallas_call(
        _conv_pool_kernel,
        out_shape=jax.ShapeDtypeStruct((Mp, Cp), jnp.bfloat16),
        grid=(grid_n,),
        in_specs=[pl.BlockSpec((tm, Kp), lambda i: (i, 0)) for _ in range(4)]
        + [
            pl.BlockSpec((Kp, Cp), lambda i: (0, 0)),
            pl.BlockSpec((1, Cp), lambda i: (0, 0)),
        ],
        out_specs=pl.BlockSpec((tm, Cp), lambda i: (i, 0)),
        compiler_params=pltpu.CompilerParams(
            dimension_semantics=("parallel",),
            vmem_limit_bytes=_vmem_limit(block_bytes),
        ),
        cost_estimate=pl.CostEstimate(
            flops=flops, transcendentals=0, bytes_accessed=bytes_accessed
        ),
    )(*corners, w_mat, b_row)
    return out[:M]


def _fc_stack_kernel(x_ref, w1_ref, b1_ref, w2_ref, b2_ref, w3_ref, b3_ref,
                     o_ref):
    """fc1 -> ReLU -> fc2 -> ReLU -> fc3 fused; intermediates stay in VMEM."""
    h = jnp.dot(x_ref[...], w1_ref[...], preferred_element_type=jnp.float32)
    h = jnp.maximum(h + b1_ref[...], 0.0).astype(jnp.bfloat16)
    h = jnp.dot(h, w2_ref[...], preferred_element_type=jnp.float32)
    h = jnp.maximum(h + b2_ref[...], 0.0).astype(jnp.bfloat16)
    h = jnp.dot(h, w3_ref[...], preferred_element_type=jnp.float32)
    o_ref[...] = (h + b3_ref[...]).astype(o_ref.dtype)


def fc_stack(x, w1, b1, w2, b2, w3, b3):
    """M-tiled fused MLP head; weights stay resident, rows are pipelined."""
    M, K = x.shape
    Kp = w1.shape[0]
    Cp = w3.shape[1]
    tm, grid_n = _pick_row_tile(M)
    Mp = tm * grid_n
    xp = jnp.pad(x.astype(jnp.bfloat16), ((0, Mp - M), (0, Kp - K)))

    w_bytes = (w1.size + w2.size + w3.size) * 2 + 3 * Cp * 4
    block_bytes = tm * Kp * 2 + w_bytes + tm * Cp * 4
    flops = 2 * Mp * (Kp * w1.shape[1]
                      + w2.shape[0] * w2.shape[1]
                      + w3.shape[0] * w3.shape[1])
    bytes_accessed = Mp * Kp * 2 + w_bytes + Mp * Cp * 4

    out = pl.pallas_call(
        _fc_stack_kernel,
        out_shape=jax.ShapeDtypeStruct((Mp, Cp), jnp.float32),
        grid=(grid_n,),
        in_specs=[
            pl.BlockSpec((tm, Kp), lambda i: (i, 0)),
            pl.BlockSpec(w1.shape, lambda i: (0, 0)),
            pl.BlockSpec((1, w1.shape[1]), lambda i: (0, 0)),
            pl.BlockSpec(w2.shape, lambda i: (0, 0)),
            pl.BlockSpec((1, w2.shape[1]), lambda i: (0, 0)),
            pl.BlockSpec(w3.shape, lambda i: (0, 0)),
            pl.BlockSpec((1, w3.shape[1]), lambda i: (0, 0)),
        ],
        out_specs=pl.BlockSpec((tm, Cp), lambda i: (i, 0)),
        compiler_params=pltpu.CompilerParams(
            dimension_semantics=("parallel",),
            vmem_limit_bytes=_vmem_limit(block_bytes),
        ),
        cost_estimate=pl.CostEstimate(
            flops=flops, transcendentals=0, bytes_accessed=bytes_accessed
        ),
    )(xp, w1, b1, w2, b2, w3, b3)
    return out[:M]


# ---------------------------------------------------------------------------
# Glue (plain JAX): im2col corner slabs, parameter prep, forward pass
# ---------------------------------------------------------------------------
def conv_pool_relu(x_nhwc, w_mat, b_row, *, k):
    """Fused conv(kxk, VALID) + bias + ReLU + 2x2/2 max-pool (NHWC).

    Only the real input channels are gathered (K stays compact: k*k*C padded
    up to a multiple of 128).  Returns (N, OH//2, OW//2, 128) in bf16.
    """
    N, H, W, C = x_nhwc.shape
    OH, OW = H - k + 1, W - k + 1
    PH, PW = OH // 2, OW // 2
    Kp, Cp = w_mat.shape
    kkc = k * k * C

    x_bf = x_nhwc.astype(jnp.bfloat16)
    corners = []
    for di in (0, 1):
        for dj in (0, 1):
            # feature order (kh, kw, cin) matches prep_params' weight reshape
            taps = [x_bf[:, di + i::2, dj + j::2, :][:, :PH, :PW, :]
                    for i in range(k) for j in range(k)]
            c = jnp.concatenate(taps, axis=-1).reshape(N * PH * PW, kkc)
            if kkc < Kp:
                c = jnp.pad(c, ((0, 0), (0, Kp - kkc)))
            corners.append(c)

    out = conv_pool_matmul(corners, w_mat, b_row)
    return out.reshape(N, PH, PW, Cp)


def init_params(key):
    ks = jax.random.split(key, 10)

    def u(k, shape, fan_in):
        bound = 1.0 / np.sqrt(fan_in)
        return jax.random.uniform(k, shape, jnp.float32, -bound, bound)

    return {
        "conv1_w": u(ks[0], (5, 5, 3, 6), 3 * 25),    # HWIO
        "conv1_b": u(ks[1], (6,), 3 * 25),
        "conv2_w": u(ks[2], (5, 5, 6, 16), 6 * 25),
        "conv2_b": u(ks[3], (16,), 6 * 25),
        "fc1_w": u(ks[4], (16 * 5 * 5, 120), 16 * 5 * 5),
        "fc1_b": u(ks[5], (120,), 16 * 5 * 5),
        "fc2_w": u(ks[6], (120, 84), 120),
        "fc2_b": u(ks[7], (84,), 120),
        "fc3_w": u(ks[8], (84, 10), 84),
        "fc3_b": u(ks[9], (10,), 84),
    }


def _pad_axis(x, axis, target):
    pad = [(0, 0)] * x.ndim
    pad[axis] = (0, target - x.shape[axis])
    return jnp.pad(x, pad)


def prep_params(params):
    """One-time weight reorder / zero-padding.

    K axes are padded only to the next multiple of 128 of the *real* feature
    count (75->128, 150->256, 400->512); Cout stays lane-dense at 128.
    """
    bf = jnp.bfloat16

    # conv1: (5,5,3,6) -> (75,6); pad K 75->128, Cout 6->128.
    w1 = params["conv1_w"].reshape(5 * 5 * 3, 6)
    w1 = _pad_axis(w1, 1, LANE)
    w1 = _pad_axis(w1, 0, _round_up(w1.shape[0], LANE))
    b1 = _pad_axis(params["conv1_b"], 0, LANE).reshape(1, LANE)

    # conv2: (5,5,6,16) -> (150,16); pad K 150->256, Cout 16->128.
    w2 = params["conv2_w"].reshape(5 * 5 * 6, 16)
    w2 = _pad_axis(w2, 1, LANE)
    w2 = _pad_axis(w2, 0, _round_up(w2.shape[0], LANE))
    b2 = _pad_axis(params["conv2_b"], 0, LANE).reshape(1, LANE)

    # fc1: torch row order is (c,h,w); permute to (h,w,c) so it consumes the
    # NHWC-flattened (16-channel) activation directly; K 400->512, Cout ->128.
    f1 = params["fc1_w"].reshape(16, 5, 5, 120)
    f1 = jnp.transpose(f1, (1, 2, 0, 3)).reshape(5 * 5 * 16, 120)
    f1 = _pad_axis(f1, 1, LANE)
    f1 = _pad_axis(f1, 0, _round_up(f1.shape[0], LANE))
    fb1 = _pad_axis(params["fc1_b"], 0, LANE).reshape(1, LANE)

    f2 = _pad_axis(_pad_axis(params["fc2_w"], 0, LANE), 1, LANE)
    fb2 = _pad_axis(params["fc2_b"], 0, LANE).reshape(1, LANE)
    f3 = _pad_axis(_pad_axis(params["fc3_w"], 0, LANE), 1, LANE)
    fb3 = _pad_axis(params["fc3_b"], 0, LANE).reshape(1, LANE)

    return {
        "c1_w": w1.astype(bf), "c1_b": b1.astype(jnp.float32),
        "c2_w": w2.astype(bf), "c2_b": b2.astype(jnp.float32),
        "f1_w": f1.astype(bf), "f1_b": fb1.astype(jnp.float32),
        "f2_w": f2.astype(bf), "f2_b": fb2.astype(jnp.float32),
        "f3_w": f3.astype(bf), "f3_b": fb3.astype(jnp.float32),
    }


@jax.jit
def cnn_forward(prepped, x_nchw):
    x = jnp.transpose(x_nchw, (0, 2, 3, 1))               # NCHW -> NHWC
    x = conv_pool_relu(x, prepped["c1_w"], prepped["c1_b"], k=5)
    x = x[..., :6]                                         # drop padded Cout
    x = conv_pool_relu(x, prepped["c2_w"], prepped["c2_b"], k=5)
    x = x[..., :16]                                        # drop padded Cout
    n = x.shape[0]
    feat = x.reshape(n, -1)        # NHWC flatten; fc1 weight already permuted
    logits = fc_stack(feat,
                      prepped["f1_w"], prepped["f1_b"],
                      prepped["f2_w"], prepped["f2_b"],
                      prepped["f3_w"], prepped["f3_b"])
    return logits[:, :10]


# Pure-JAX f32 reference for correctness checking.
def cnn_reference(params, x_nchw):
    x = jnp.transpose(x_nchw, (0, 2, 3, 1))

    def conv(x, w, b):
        y = jax.lax.conv_general_dilated(
            x, w, (1, 1), "VALID", dimension_numbers=("NHWC", "HWIO", "NHWC")
        )
        return jnp.maximum(y + b, 0.0)

    def pool(x):
        N, H, W, C = x.shape
        return jnp.max(x.reshape(N, H // 2, 2, W // 2, 2, C), axis=(2, 4))

    x = pool(conv(x, params["conv1_w"], params["conv1_b"]))
    x = pool(conv(x, params["conv2_w"], params["conv2_b"]))
    N = x.shape[0]
    x = jnp.transpose(x, (0, 3, 1, 2)).reshape(N, 16 * 5 * 5)
    x = jnp.maximum(x @ params["fc1_w"] + params["fc1_b"], 0.0)
    x = jnp.maximum(x @ params["fc2_w"] + params["fc2_b"], 0.0)
    return x @ params["fc3_w"] + params["fc3_b"]


if __name__ == "__main__":
    key = jax.random.PRNGKey(0)
    k_params, k_x = jax.random.split(key)
    params = init_params(k_params)
    # fc1 expects 16*5*5 features -> spatial input must be 32x32 (LeNet/CIFAR).
    x = jax.random.normal(k_x, (2, 3, 32, 32), dtype=jnp.float32)

    prepped = prep_params(params)
    out = jax.block_until_ready(cnn_forward(prepped, x))
    ref = jax.block_until_ready(cnn_reference(params, x))

    assert out.shape == (2, 10), out.shape
    # bf16 inputs / f32 accumulation -> slightly relaxed tolerance.
    np.testing.assert_allclose(np.asarray(out), np.asarray(ref), rtol=2e-2, atol=2e-2)
    print("KERNEL_OK")
</pallas_src>

<mosaic_0001>
module attributes {stable_mosaic.version = 11 : i64} {
  func.func @_conv_pool_kernel(%arg0: i32, %arg1: memref<208x128xbf16, #tpu.memory_space<vmem>>, %arg2: memref<208x128xbf16, #tpu.memory_space<vmem>>, %arg3: memref<208x128xbf16, #tpu.memory_space<vmem>>, %arg4: memref<208x128xbf16, #tpu.memory_space<vmem>>, %arg5: memref<128x128xbf16, #tpu.memory_space<vmem>>, %arg6: memref<1x128xf32, #tpu.memory_space<vmem>>, %arg7: memref<208x128xbf16, #tpu.memory_space<vmem>>) attributes {dimension_semantics = [#tpu.dimension_semantics<parallel>], iteration_bounds = array<i64: 2>, scalar_prefetch = 0 : i64, scratch_operands = 0 : i64, tpu.core_type = #tpu.core_type<tc>, window_params = [{transform_indices = @transform_0, window_bounds = array<i64: 208, 128>}, {transform_indices = @transform_1, window_bounds = array<i64: 208, 128>}, {transform_indices = @transform_2, window_bounds = array<i64: 208, 128>}, {transform_indices = @transform_3, window_bounds = array<i64: 208, 128>}, {pipeline_mode = #tpu.pipeline_mode<synchronous>, transform_indices = @transform_4, window_bounds = array<i64: 128, 128>}, {pipeline_mode = #tpu.pipeline_mode<synchronous>, transform_indices = @transform_5, window_bounds = array<i64: 1, 128>}, {transform_indices = @transform_6, window_bounds = array<i64: 208, 128>}]} {
    %c0 = arith.constant 0 : index
    %c0_0 = arith.constant 0 : index
    %0 = vector.load %arg5[%c0, %c0_0] : memref<128x128xbf16, #tpu.memory_space<vmem>>, vector<128x128xbf16>
    %c0_1 = arith.constant 0 : index
    %c0_2 = arith.constant 0 : index
    %1 = vector.load %arg1[%c0_1, %c0_2] : memref<208x128xbf16, #tpu.memory_space<vmem>>, vector<208x128xbf16>
    %cst = arith.constant dense<0.000000e+00> : vector<208x128xf32>
    %2 = tpu.matmul %1, %0, %cst {dimension_numbers = #tpu.dot_dimension_numbers<[1], [0], [0], [1], [0, 0, 1, 1], [], []>} : vector<208x128xbf16>, vector<128x128xbf16>, vector<208x128xf32> -> vector<208x128xf32>
    %c0_3 = arith.constant 0 : index
    %c0_4 = arith.constant 0 : index
    %3 = vector.load %arg2[%c0_3, %c0_4] : memref<208x128xbf16, #tpu.memory_space<vmem>>, vector<208x128xbf16>
    %cst_5 = arith.constant dense<0.000000e+00> : vector<208x128xf32>
    %4 = tpu.matmul %3, %0, %cst_5 {dimension_numbers = #tpu.dot_dimension_numbers<[1], [0], [0], [1], [0, 0, 1, 1], [], []>} : vector<208x128xbf16>, vector<128x128xbf16>, vector<208x128xf32> -> vector<208x128xf32>
    %5 = arith.maximumf %2, %4 : vector<208x128xf32>
    %c0_6 = arith.constant 0 : index
    %c0_7 = arith.constant 0 : index
    %6 = vector.load %arg3[%c0_6, %c0_7] : memref<208x128xbf16, #tpu.memory_space<vmem>>, vector<208x128xbf16>
    %cst_8 = arith.constant dense<0.000000e+00> : vector<208x128xf32>
    %7 = tpu.matmul %6, %0, %cst_8 {dimension_numbers = #tpu.dot_dimension_numbers<[1], [0], [0], [1], [0, 0, 1, 1], [], []>} : vector<208x128xbf16>, vector<128x128xbf16>, vector<208x128xf32> -> vector<208x128xf32>
    %8 = arith.maximumf %5, %7 : vector<208x128xf32>
    %c0_9 = arith.constant 0 : index
    %c0_10 = arith.constant 0 : index
    %9 = vector.load %arg4[%c0_9, %c0_10] : memref<208x128xbf16, #tpu.memory_space<vmem>>, vector<208x128xbf16>
    %cst_11 = arith.constant dense<0.000000e+00> : vector<208x128xf32>
    %10 = tpu.matmul %9, %0, %cst_11 {dimension_numbers = #tpu.dot_dimension_numbers<[1], [0], [0], [1], [0, 0, 1, 1], [], []>} : vector<208x128xbf16>, vector<128x128xbf16>, vector<208x128xf32> -> vector<208x128xf32>
    %11 = arith.maximumf %8, %10 : vector<208x128xf32>
    %c0_12 = arith.constant 0 : index
    %c0_13 = arith.constant 0 : index
    %12 = vector.load %arg6[%c0_12, %c0_13] : memref<1x128xf32, #tpu.memory_space<vmem>>, vector<1x128xf32>
    %13 = vector.broadcast %12 : vector<1x128xf32> to vector<208x128xf32>
    %14 = arith.addf %11, %13 : vector<208x128xf32>
    %cst_14 = arith.constant 0.000000e+00 : f32
    %15 = vector.broadcast %cst_14 : f32 to vector<208x128xf32>
    %16 = arith.maximumf %14, %15 : vector<208x128xf32>
    %17 = arith.truncf %16 : vector<208x128xf32> to vector<208x128xbf16>
    %c0_15 = arith.constant 0 : index
    %c0_16 = arith.constant 0 : index
    %18 = vector.load %arg7[%c0_15, %c0_16] : memref<208x128xbf16, #tpu.memory_space<vmem>>, vector<208x128xbf16>
    tpu.vector_store %arg7[%c0_15, %c0_16], %17 {strides = array<i32>} : memref<208x128xbf16, #tpu.memory_space<vmem>>, vector<208x128xbf16>,
    return
  }
  func.func @transform_0(%arg0: i32) -> (i32, i32) {
    %c0_i32 = arith.constant 0 : i32
    %c0_i32_0 = arith.constant 0 : i32
    return %arg0, %c0_i32 : i32, i32
  }
  func.func @transform_1(%arg0: i32) -> (i32, i32) {
    %c0_i32 = arith.constant 0 : i32
    %c0_i32_0 = arith.constant 0 : i32
    return %arg0, %c0_i32 : i32, i32
  }
  func.func @transform_2(%arg0: i32) -> (i32, i32) {
    %c0_i32 = arith.constant 0 : i32
    %c0_i32_0 = arith.constant 0 : i32
    return %arg0, %c0_i32 : i32, i32
  }
  func.func @transform_3(%arg0: i32) -> (i32, i32) {
    %c0_i32 = arith.constant 0 : i32
    %c0_i32_0 = arith.constant 0 : i32
    return %arg0, %c0_i32 : i32, i32
  }
  func.func @transform_4(%arg0: i32) -> (i32, i32) {
    %c0_i32 = arith.constant 0 : i32
    %c0_i32_0 = arith.constant 0 : i32
    %c0_i32_1 = arith.constant 0 : i32
    return %c0_i32, %c0_i32_0 : i32, i32
  }
  func.func @transform_5(%arg0: i32) -> (i32, i32) {
    %c0_i32 = arith.constant 0 : i32
    %c0_i32_0 = arith.constant 0 : i32
    %c0_i32_1 = arith.constant 0 : i32
    return %c0_i32, %c0_i32_0 : i32, i32
  }
  func.func @transform_6(%arg0: i32) -> (i32, i32) {
    %c0_i32 = arith.constant 0 : i32
    %c0_i32_0 = arith.constant 0 : i32
    return %arg0, %c0_i32 : i32, i32
  }
}

module attributes {stable_mosaic.version = 11 : i64} {
  func.func @_conv_pool_kernel(%arg0: i32, %arg1: memref<32x256xbf16, #tpu.memory_space<vmem>>, %arg2: memref<32x256xbf16, #tpu.memory_space<vmem>>, %arg3: memref<32x256xbf16, #tpu.memory_space<vmem>>, %arg4: memref<32x256xbf16, #tpu.memory_space<vmem>>, %arg5: memref<256x128xbf16, #tpu.memory_space<vmem>>, %arg6: memref<1x128xf32, #tpu.memory_space<vmem>>, %arg7: memref<32x128xbf16, #tpu.memory_space<vmem>>) attributes {dimension_semantics = [#tpu.dimension_semantics<parallel>], iteration_bounds = array<i64: 2>, scalar_prefetch = 0 : i64, scratch_operands = 0 : i64, tpu.core_type = #tpu.core_type<tc>, window_params = [{transform_indices = @transform_0, window_bounds = array<i64: 32, 256>}, {transform_indices = @transform_1, window_bounds = array<i64: 32, 256>}, {transform_indices = @transform_2, window_bounds = array<i64: 32, 256>}, {transform_indices = @transform_3, window_bounds = array<i64: 32, 256>}, {pipeline_mode = #tpu.pipeline_mode<synchronous>, transform_indices = @transform_4, window_bounds = array<i64: 256, 128>}, {pipeline_mode = #tpu.pipeline_mode<synchronous>, transform_indices = @transform_5, window_bounds = array<i64: 1, 128>}, {transform_indices = @transform_6, window_bounds = array<i64: 32, 128>}]} {
    %c0 = arith.constant 0 : index
    %c0_0 = arith.constant 0 : index
    %0 = vector.load %arg5[%c0, %c0_0] : memref<256x128xbf16, #tpu.memory_space<vmem>>, vector<256x128xbf16>
    %c0_1 = arith.constant 0 : index
    %c0_2 = arith.constant 0 : index
    %1 = vector.load %arg1[%c0_1, %c0_2] : memref<32x256xbf16, #tpu.memory_space<vmem>>, vector<32x256xbf16>
    %cst = arith.constant dense<0.000000e+00> : vector<32x128xf32>
    %2 = tpu.matmul %1, %0, %cst {dimension_numbers = #tpu.dot_dimension_numbers<[1], [0], [0], [1], [0, 0, 1, 1], [], []>} : vector<32x256xbf16>, vector<256x128xbf16>, vector<32x128xf32> -> vector<32x128xf32>
    %c0_3 = arith.constant 0 : index
    %c0_4 = arith.constant 0 : index
    %3 = vector.load %arg2[%c0_3, %c0_4] : memref<32x256xbf16, #tpu.memory_space<vmem>>, vector<32x256xbf16>
    %cst_5 = arith.constant dense<0.000000e+00> : vector<32x128xf32>
    %4 = tpu.matmul %3, %0, %cst_5 {dimension_numbers = #tpu.dot_dimension_numbers<[1], [0], [0], [1], [0, 0, 1, 1], [], []>} : vector<32x256xbf16>, vector<256x128xbf16>, vector<32x128xf32> -> vector<32x128xf32>
    %5 = arith.maximumf %2, %4 : vector<32x128xf32>
    %c0_6 = arith.constant 0 : index
    %c0_7 = arith.constant 0 : index
    %6 = vector.load %arg3[%c0_6, %c0_7] : memref<32x256xbf16, #tpu.memory_space<vmem>>, vector<32x256xbf16>
    %cst_8 = arith.constant dense<0.000000e+00> : vector<32x128xf32>
    %7 = tpu.matmul %6, %0, %cst_8 {dimension_numbers = #tpu.dot_dimension_numbers<[1], [0], [0], [1], [0, 0, 1, 1], [], []>} : vector<32x256xbf16>, vector<256x128xbf16>, vector<32x128xf32> -> vector<32x128xf32>
    %8 = arith.maximumf %5, %7 : vector<32x128xf32>
    %c0_9 = arith.constant 0 : index
    %c0_10 = arith.constant 0 : index
    %9 = vector.load %arg4[%c0_9, %c0_10] : memref<32x256xbf16, #tpu.memory_space<vmem>>, vector<32x256xbf16>
    %cst_11 = arith.constant dense<0.000000e+00> : vector<32x128xf32>
    %10 = tpu.matmul %9, %0, %cst_11 {dimension_numbers = #tpu.dot_dimension_numbers<[1], [0], [0], [1], [0, 0, 1, 1], [], []>} : vector<32x256xbf16>, vector<256x128xbf16>, vector<32x128xf32> -> vector<32x128xf32>
    %11 = arith.maximumf %8, %10 : vector<32x128xf32>
    %c0_12 = arith.constant 0 : index
    %c0_13 = arith.constant 0 : index
    %12 = vector.load %arg6[%c0_12, %c0_13] : memref<1x128xf32, #tpu.memory_space<vmem>>, vector<1x128xf32>
    %13 = vector.broadcast %12 : vector<1x128xf32> to vector<32x128xf32>
    %14 = arith.addf %11, %13 : vector<32x128xf32>
    %cst_14 = arith.constant 0.000000e+00 : f32
    %15 = vector.broadcast %cst_14 : f32 to vector<32x128xf32>
    %16 = arith.maximumf %14, %15 : vector<32x128xf32>
    %17 = arith.truncf %16 : vector<32x128xf32> to vector<32x128xbf16>
    %c0_15 = arith.constant 0 : index
    %c0_16 = arith.constant 0 : index
    %18 = vector.load %arg7[%c0_15, %c0_16] : memref<32x128xbf16, #tpu.memory_space<vmem>>, vector<32x128xbf16>
    tpu.vector_store %arg7[%c0_15, %c0_16], %17 {strides = array<i32>} : memref<32x128xbf16, #tpu.memory_space<vmem>>, vector<32x128xbf16>,
    return
  }
  func.func @transform_0(%arg0: i32) -> (i32, i32) {
    %c0_i32 = arith.constant 0 : i32
    %c0_i32_0 = arith.constant 0 : i32
    return %arg0, %c0_i32 : i32, i32
  }
  func.func @transform_1(%arg0: i32) -> (i32, i32) {
    %c0_i32 = arith.constant 0 : i32
    %c0_i32_0 = arith.constant 0 : i32
    return %arg0, %c0_i32 : i32, i32
  }
  func.func @transform_2(%arg0: i32) -> (i32, i32) {
    %c0_i32 = arith.constant 0 : i32
    %c0_i32_0 = arith.constant 0 : i32
    return %arg0, %c0_i32 : i32, i32
  }
  func.func @transform_3(%arg0: i32) -> (i32, i32) {
    %c0_i32 = arith.constant 0 : i32
    %c0_i32_0 = arith.constant 0 : i32
    return %arg0, %c0_i32 : i32, i32
  }
  func.func @transform_4(%arg0: i32) -> (i32, i32) {
    %c0_i32 = arith.constant 0 : i32
    %c0_i32_0 = arith.constant 0 : i32
    %c0_i32_1 = arith.constant 0 : i32
    return %c0_i32, %c0_i32_0 : i32, i32
  }
  func.func @transform_5(%arg0: i32) -> (i32, i32) {
    %c0_i32 = arith.constant 0 : i32
    %c0_i32_0 = arith.constant 0 : i32
    %c0_i32_1 = arith.constant 0 : i32
    return %c0_i32, %c0_i32_0 : i32, i32
  }
  func.func @transform_6(%arg0: i32) -> (i32, i32) {
    %c0_i32 = arith.constant 0 : i32
    %c0_i32_0 = arith.constant 0 : i32
    return %arg0, %c0_i32 : i32, i32
  }
}

module attributes {stable_mosaic.version = 11 : i64} {
  func.func @_fc_stack_kernel(%arg0: i32, %arg1: memref<16x512xbf16, #tpu.memory_space<vmem>>, %arg2: memref<512x128xbf16, #tpu.memory_space<vmem>>, %arg3: memref<1x128xf32, #tpu.memory_space<vmem>>, %arg4: memref<128x128xbf16, #tpu.memory_space<vmem>>, %arg5: memref<1x128xf32, #tpu.memory_space<vmem>>, %arg6: memref<128x128xbf16, #tpu.memory_space<vmem>>, %arg7: memref<1x128xf32, #tpu.memory_space<vmem>>, %arg8: memref<16x128xf32, #tpu.memory_space<vmem>>) attributes {dimension_semantics = [#tpu.dimension_semantics<parallel>], iteration_bounds = array<i64: 1>, scalar_prefetch = 0 : i64, scratch_operands = 0 : i64, tpu.core_type = #tpu.core_type<tc>, window_params = [{transform_indices = @transform_0, window_bounds = array<i64: 16, 512>}, {pipeline_mode = #tpu.pipeline_mode<synchronous>, transform_indices = @transform_1, window_bounds = array<i64: 512, 128>}, {pipeline_mode = #tpu.pipeline_mode<synchronous>, transform_indices = @transform_2, window_bounds = array<i64: 1, 128>}, {pipeline_mode = #tpu.pipeline_mode<synchronous>, transform_indices = @transform_3, window_bounds = array<i64: 128, 128>}, {pipeline_mode = #tpu.pipeline_mode<synchronous>, transform_indices = @transform_4, window_bounds = array<i64: 1, 128>}, {pipeline_mode = #tpu.pipeline_mode<synchronous>, transform_indices = @transform_5, window_bounds = array<i64: 128, 128>}, {pipeline_mode = #tpu.pipeline_mode<synchronous>, transform_indices = @transform_6, window_bounds = array<i64: 1, 128>}, {transform_indices = @transform_7, window_bounds = array<i64: 16, 128>}]} {
    %c0 = arith.constant 0 : index
    %c0_0 = arith.constant 0 : index
    %0 = vector.load %arg1[%c0, %c0_0] : memref<16x512xbf16, #tpu.memory_space<vmem>>, vector<16x512xbf16>
    %c0_1 = arith.constant 0 : index
    %c0_2 = arith.constant 0 : index
    %1 = vector.load %arg2[%c0_1, %c0_2] : memref<512x128xbf16, #tpu.memory_space<vmem>>, vector<512x128xbf16>
    %cst = arith.constant dense<0.000000e+00> : vector<16x128xf32>
    %2 = tpu.matmul %0, %1, %cst {dimension_numbers = #tpu.dot_dimension_numbers<[1], [0], [0], [1], [0, 0, 1, 1], [], []>} : vector<16x512xbf16>, vector<512x128xbf16>, vector<16x128xf32> -> vector<16x128xf32>
    %c0_3 = arith.constant 0 : index
    %c0_4 = arith.constant 0 : index
    %3 = vector.load %arg3[%c0_3, %c0_4] : memref<1x128xf32, #tpu.memory_space<vmem>>, vector<1x128xf32>
    %4 = vector.broadcast %3 : vector<1x128xf32> to vector<16x128xf32>
    %5 = arith.addf %2, %4 : vector<16x128xf32>
    %cst_5 = arith.constant 0.000000e+00 : f32
    %6 = vector.broadcast %cst_5 : f32 to vector<16x128xf32>
    %7 = arith.maximumf %5, %6 : vector<16x128xf32>
    %8 = arith.truncf %7 : vector<16x128xf32> to vector<16x128xbf16>
    %c0_6 = arith.constant 0 : index
    %c0_7 = arith.constant 0 : index
    %9 = vector.load %arg4[%c0_6, %c0_7] : memref<128x128xbf16, #tpu.memory_space<vmem>>, vector<128x128xbf16>
    %cst_8 = arith.constant dense<0.000000e+00> : vector<16x128xf32>
    %10 = tpu.matmul %8, %9, %cst_8 {dimension_numbers = #tpu.dot_dimension_numbers<[1], [0], [0], [1], [0, 0, 1, 1], [], []>} : vector<16x128xbf16>, vector<128x128xbf16>, vector<16x128xf32> -> vector<16x128xf32>
    %c0_9 = arith.constant 0 : index
    %c0_10 = arith.constant 0 : index
    %11 = vector.load %arg5[%c0_9, %c0_10] : memref<1x128xf32, #tpu.memory_space<vmem>>, vector<1x128xf32>
    %12 = vector.broadcast %11 : vector<1x128xf32> to vector<16x128xf32>
    %13 = arith.addf %10, %12 : vector<16x128xf32>
    %cst_11 = arith.constant 0.000000e+00 : f32
    %14 = vector.broadcast %cst_11 : f32 to vector<16x128xf32>
    %15 = arith.maximumf %13, %14 : vector<16x128xf32>
    %16 = arith.truncf %15 : vector<16x128xf32> to vector<16x128xbf16>
    %c0_12 = arith.constant 0 : index
    %c0_13 = arith.constant 0 : index
    %17 = vector.load %arg6[%c0_12, %c0_13] : memref<128x128xbf16, #tpu.memory_space<vmem>>, vector<128x128xbf16>
    %cst_14 = arith.constant dense<0.000000e+00> : vector<16x128xf32>
    %18 = tpu.matmul %16, %17, %cst_14 {dimension_numbers = #tpu.dot_dimension_numbers<[1], [0], [0], [1], [0, 0, 1, 1], [], []>} : vector<16x128xbf16>, vector<128x128xbf16>, vector<16x128xf32> -> vector<16x128xf32>
    %c0_15 = arith.constant 0 : index
    %c0_16 = arith.constant 0 : index
    %19 = vector.load %arg7[%c0_15, %c0_16] : memref<1x128xf32, #tpu.memory_space<vmem>>, vector<1x128xf32>
    %20 = vector.broadcast %19 : vector<1x128xf32> to vector<16x128xf32>
    %21 = arith.addf %18, %20 : vector<16x128xf32>
    %c0_17 = arith.constant 0 : index
    %c0_18 = arith.constant 0 : index
    %22 = vector.load %arg8[%c0_17, %c0_18] : memref<16x128xf32, #tpu.memory_space<vmem>>, vector<16x128xf32>
    tpu.vector_store %arg8[%c0_17, %c0_18], %21 {strides = array<i32>} : memref<16x128xf32, #tpu.memory_space<vmem>>, vector<16x128xf32>,
    return
  }
  func.func @transform_0(%arg0: i32) -> (i32, i32) {
    %c0_i32 = arith.constant 0 : i32
    %c0_i32_0 = arith.constant 0 : i32
    return %arg0, %c0_i32 : i32, i32
  }
  func.func @transform_1(%arg0: i32) -> (i32, i32) {
    %c0_i32 = arith.constant 0 : i32
    %c0_i32_0 = arith.constant 0 : i32
    %c0_i32_1 = arith.constant 0 : i32
    return %c0_i32, %c0_i32_0 : i32, i32
  }
  func.func @transform_2(%arg0: i32) -> (i32, i32) {
    %c0_i32 = arith.constant 0 : i32
    %c0_i32_0 = arith.constant 0 : i32
    %c0_i32_1 = arith.constant 0 : i32
    return %c0_i32, %c0_i32_0 : i32, i32
  }
  func.func @transform_3(%arg0: i32) -> (i32, i32) {
    %c0_i32 = arith.constant 0 : i32
    %c0_i32_0 = arith.constant 0 : i32
    %c0_i32_1 = arith.constant 0 : i32
    return %c0_i32, %c0_i32_0 : i32, i32
  }
  func.func @transform_4(%arg0: i32) -> (i32, i32) {
    %c0_i32 = arith.constant 0 : i32
    %c0_i32_0 = arith.constant 0 : i32
    %c0_i32_1 = arith.constant 0 : i32
    return %c0_i32, %c0_i32_0 : i32, i32
  }
  func.func @transform_5(%arg0: i32) -> (i32, i32) {
    %c0_i32 = arith.constant 0 : i32
    %c0_i32_0 = arith.constant 0 : i32
    %c0_i32_1 = arith.constant 0 : i32
    return %c0_i32, %c0_i32_0 : i32, i32
  }
  func.func @transform_6(%arg0: i32) -> (i32, i32) {
    %c0_i32 = arith.constant 0 : i32
    %c0_i32_0 = arith.constant 0 : i32
    %c0_i32_1 = arith.constant 0 : i32
    return %c0_i32, %c0_i32_0 : i32, i32
  }
  func.func @transform_7(%arg0: i32) -> (i32, i32) {
    %c0_i32 = arith.constant 0 : i32
    %c0_i32_0 = arith.constant 0 : i32
    return %arg0, %c0_i32 : i32, i32
  }
}

</mosaic_0001>

<bundles_post_ra>
// kernel: cnn_forward.3
= control target key start
LH: loop header
LB: loop body
LE: loop exit
PB: predicated region body
PF: predicated region fallthrough
CT: control target
= control target key end

     0   :  { %s1816_s21 = smov 0   ;;  %s1979_s0 = inlined_call_operand.vmem [shape: bf16[416,128], index: 0, kind: input, shape index: {}]   ;;  %s1980_s1 = inlined_call_operand.vmem [shape: bf16[416,128], index: 1, kind: input, shape index: {}]   ;;  %s1981_s2 = inlined_call_operand.vmem [shape: bf16[416,128], index: 2, kind: input, shape index: {}]   ;;  %s1982_s3 = inlined_call_operand.vmem [shape: bf16[416,128], index: 3, kind: input, shape index: {}]   ;;  %s1983_s4 = inlined_call_operand.vmem [shape: bf16[128,128], index: 4, kind: input, shape index: {}]   ;;  %s1984_s5 = inlined_call_operand.vmem [shape: f32[1,128], index: 5, kind: input, shape index: {}]   ;;  %s1985_s6 = inlined_call_operand.vmem [shape: bf16[416,128], index: 6, kind: output, shape index: {}]  }
   0x1 LB: > { %s1375_s22 = sadd.s32 4294967295, %s1779_s21   ;;  %p1379_p0 = scmp.ge.s32.totalorder %s1779_s21, 1  ;;  %s1779_s21 = sphi %s1816_s21, %s16_s21  }
   0x2   : > { %p246_p1 = scmp.lt.s32.totalorder %s1779_s21, 3 }
   0x4   : > { %p247_p2 = pnand %p1379_p0, %p246_p1 }
   0x5   : > { %s291_s7 = smul.u32 (!%p247_p2), 26, %s1375_s22 }
   0x6   : > { %250 = sbr.rel (%p247_p2) target bundleno = 387 (0x183), region = 44 }
   0x7   : > { %p292_p3 = scmp.lt.s32.totalorder (!%p247_p2), %s291_s7, 51 }
   0xb   : > { %v1634_v0 = vld [vmem:[%s1983_s4 + $0x38] sm:$0xff]  ;;  %v1633_v1 = vld [vmem:[%s1983_s4 + $0x30] sm:$0xff]  ;;  %v1632_v2 = vld [vmem:[%s1983_s4 + $0x28] sm:$0xff]  ;;  %s1987_s7 = smov (!%p292_p3, %s291_s7), 51 }
   0xc   : > { %489 = vmatpush.bf16.msra.mxu0 %v1634_v0  ;;  %667 = vmatpush.bf16.msra.mxu1 %v1634_v0  ;;  %v1631_v3 = vld [vmem:[%s1983_s4 + $0x20] sm:$0xff]  ;;  %v1630_v4 = vld [vmem:[%s1983_s4 + $0x18] sm:$0xff]  ;;  %v1629_v5 = vld [vmem:[%s1983_s4 + $0x10] sm:$0xff]  ;;  %s1845_s14 = sshll.u32 %s1987_s7, 2 }
   0xd   : > { %871 = vmatpush.bf16.msra.mxu2 %v1634_v0  ;;  %1075 = vmatpush.bf16.msra.mxu3 %v1634_v0  ;;  %v1628_v6 = vld [vmem:[%s1983_s4 + $0x8] sm:$0xff]  ;;  %v1627_v7 = vld [vmem:[%s1983_s4] sm:$0xff]  ;;  %s1854_s19 = scalar_lea.vmem %s1979_s0, %s1845_s14  ;;  %s1860_s23 = scalar_lea.vmem %s1980_s1, %s1845_s14 }
   0xe   : > { %s1866_s26 = scalar_lea.vmem %s1981_s2, %s1845_s14  ;;  %s1872_s29 = scalar_lea.vmem %s1982_s3, %s1845_s14  ;;  %v1635_v8 = vld [vmem:[%s1854_s19] sm:$0xff]  ;;  %v1636_v12 = vld [vmem:[%s1854_s19 + $0x8] sm:$0xff]  ;;  %v1637_v16 = vld [vmem:[%s1854_s19 + $0x10] sm:$0xff] }
   0xf   : > { %v1648_v9 = vld [vmem:[%s1860_s23] sm:$0xff]  ;;  %v1649_v13 = vld [vmem:[%s1860_s23 + $0x8] sm:$0xff]  ;;  %v1650_v17 = vld [vmem:[%s1860_s23 + $0x10] sm:$0xff]  ;;  %s1925_s10 = scalar_lea.vmem %s1985_s6, %s1845_s14 }
  0x10   : > { %490 = vmatpush.bf16.msra.mxu0 %v1633_v1  ;;  %668 = vmatpush.bf16.msra.mxu1 %v1633_v1  ;;  %v1661_v10 = vld [vmem:[%s1866_s26] sm:$0xff]  ;;  %v1662_v14 = vld [vmem:[%s1866_s26 + $0x8] sm:$0xff]  ;;  %v1663_v18 = vld [vmem:[%s1866_s26 + $0x10] sm:$0xff] }
  0x11   : > { %872 = vmatpush.bf16.msra.mxu2 %v1633_v1  ;;  %1076 = vmatpush.bf16.msra.mxu3 %v1633_v1  ;;  %v1674_v11 = vld [vmem:[%s1872_s29] sm:$0xff]  ;;  %v1675_v15 = vld [vmem:[%s1872_s29 + $0x8] sm:$0xff]  ;;  %v1676_v19 = vld [vmem:[%s1872_s29 + $0x10] sm:$0xff] }
  0x12   : > { %v1638_v20 = vld [vmem:[%s1854_s19 + $0x18] sm:$0xff]  ;;  %v1639_v24 = vld [vmem:[%s1854_s19 + $0x20] sm:$0xff]  ;;  %v1640_v28 = vld [vmem:[%s1854_s19 + $0x28] sm:$0xff] }
  0x13   : > { %v1651_v21 = vld [vmem:[%s1860_s23 + $0x18] sm:$0xff]  ;;  %v1652_v25 = vld [vmem:[%s1860_s23 + $0x20] sm:$0xff]  ;;  %v1653_v29 = vld [vmem:[%s1860_s23 + $0x28] sm:$0xff] }
  0x14   : > { %491 = vmatpush.bf16.msra.mxu0 %v1632_v2  ;;  %669 = vmatpush.bf16.msra.mxu1 %v1632_v2  ;;  %v1664_v22 = vld [vmem:[%s1866_s26 + $0x18] sm:$0xff]  ;;  %v1665_v26 = vld [vmem:[%s1866_s26 + $0x20] sm:$0xff]  ;;  %v1666_v30 = vld [vmem:[%s1866_s26 + $0x28] sm:$0xff] }
  0x15   : > { %873 = vmatpush.bf16.msra.mxu2 %v1632_v2  ;;  %1077 = vmatpush.bf16.msra.mxu3 %v1632_v2  ;;  %v1677_v23 = vld [vmem:[%s1872_s29 + $0x18] sm:$0xff]  ;;  %v1678_v27 = vld [vmem:[%s1872_s29 + $0x20] sm:$0xff]  ;;  %v1679_v31 = vld [vmem:[%s1872_s29 + $0x28] sm:$0xff] }
  0x16   : > { %v1641_v32 = vld [vmem:[%s1854_s19 + $0x30] sm:$0xff]  ;;  %v1642_v36 = vld [vmem:[%s1854_s19 + $0x38] sm:$0xff]  ;;  %v1643_v40 = vld [vmem:[%s1854_s19 + $0x40] sm:$0xff] }
  0x17   : > { %v1654_v33 = vld [vmem:[%s1860_s23 + $0x30] sm:$0xff]  ;;  %v1655_v37 = vld [vmem:[%s1860_s23 + $0x38] sm:$0xff]  ;;  %v1656_v41 = vld [vmem:[%s1860_s23 + $0x40] sm:$0xff] }
  0x18   : > { %492 = vmatpush.bf16.msra.mxu0 %v1631_v3  ;;  %670 = vmatpush.bf16.msra.mxu1 %v1631_v3  ;;  %v1667_v34 = vld [vmem:[%s1866_s26 + $0x30] sm:$0xff]  ;;  %v1668_v38 = vld [vmem:[%s1866_s26 + $0x38] sm:$0xff]  ;;  %v1669_v44 = vld [vmem:[%s1866_s26 + $0x40] sm:$0xff] }
  0x19   : > { %874 = vmatpush.bf16.msra.mxu2 %v1631_v3  ;;  %1078 = vmatpush.bf16.msra.mxu3 %v1631_v3  ;;  %v1680_v35 = vld [vmem:[%s1872_s29 + $0x30] sm:$0xff]  ;;  %v1681_v39 = vld [vmem:[%s1872_s29 + $0x38] sm:$0xff]  ;;  %v1682_v45 = vld [vmem:[%s1872_s29 + $0x40] sm:$0xff] }
  0x1a   : > { %v1913_v53 = vld [vmem:[%s1984_s5] ss:$0 sm:$0xff]  ;;  %v1644_v57 = vld [vmem:[%s1854_s19 + $0x48] sm:$0xff] }
  0x1b   : > { %v1657_v58 = vld [vmem:[%s1860_s23 + $0x48] sm:$0xff] }
  0x1c   : > { %493 = vmatpush.bf16.msra.mxu0 %v1630_v4  ;;  %671 = vmatpush.bf16.msra.mxu1 %v1630_v4  ;;  %v1670_v62 = vld [vmem:[%s1866_s26 + $0x48] sm:$0xff] }
  0x1d   : > { %875 = vmatpush.bf16.msra.mxu2 %v1630_v4  ;;  %1079 = vmatpush.bf16.msra.mxu3 %v1630_v4  ;;  %v1683_v63 = vld [vmem:[%s1872_s29 + $0x48] sm:$0xff] }
  0x20   : > { %494 = vmatpush.bf16.msra.mxu0 %v1629_v5  ;;  %672 = vmatpush.bf16.msra.mxu1 %v1629_v5 }
  0x21   : > { %876 = vmatpush.bf16.msra.mxu2 %v1629_v5  ;;  %1080 = vmatpush.bf16.msra.mxu3 %v1629_v5 }
  0x24   : > { %495 = vmatpush.bf16.msra.mxu0 %v1628_v6  ;;  %673 = vmatpush.bf16.msra.mxu1 %v1628_v6 }
  0x25   : > { %877 = vmatpush.bf16.msra.mxu2 %v1628_v6  ;;  %1081 = vmatpush.bf16.msra.mxu3 %v1628_v6 }
  0x28   : > { %496 = vmatpush.bf16.msra.mxu0 %v1627_v7  ;;  %674 = vmatpush.bf16.msra.mxu1 %v1627_v7 }
  0x29   : > { %878 = vmatpush.bf16.msra.mxu2 %v1627_v7  ;;  %1082 = vmatpush.bf16.msra.mxu3 %v1627_v7 }
  0x2b   : > { %497 = vmatmul.bf16.vlgmr.msra.gmra.mxu0 %v1635_v8  ;;  %675 = vmatmul.bf16.vlgmr.msra.gmra.mxu1 %v1648_v9 }
  0x2c   : > { %879 = vmatmul.bf16.vlgmr.msra.gmra.mxu2 %v1661_v10  ;;  %1083 = vmatmul.bf16.vlgmr.msra.gmra.mxu3 %v1674_v11 }
  0x3b   : > { %502 = vmatmul.bf16.gmra.mxu0 %v1636_v12  ;;  %680 = vmatmul.bf16.gmra.mxu1 %v1649_v13 }
  0x3c   : > { %884 = vmatmul.bf16.gmra.mxu2 %v1662_v14  ;;  %1088 = vmatmul.bf16.gmra.mxu3 %v1675_v15 }
  0x4b   : > { %507 = vmatmul.bf16.gmra.mxu0 %v1637_v16  ;;  %685 = vmatmul.bf16.gmra.mxu1 %v1650_v17  ;;  %v1645_v16 = vld [vmem:[%s1854_s19 + $0x50] sm:$0xff] }
  0x4c   : > { %889 = vmatmul.bf16.gmra.mxu2 %v1663_v18  ;;  %1093 = vmatmul.bf16.gmra.mxu3 %v1676_v19  ;;  %v1658_v17 = vld [vmem:[%s1860_s23 + $0x50] sm:$0xff] }
  0x5b   : > { %512 = vmatmul.bf16.gmra.mxu0 %v1638_v20  ;;  %690 = vmatmul.bf16.gmra.mxu1 %v1651_v21  ;;  %v1671_v21 = vld [vmem:[%s1866_s26 + $0x50] sm:$0xff] }
  0x5c   : > { %894 = vmatmul.bf16.gmra.mxu2 %v1664_v22  ;;  %1098 = vmatmul.bf16.gmra.mxu3 %v1677_v23  ;;  %v1684_v22 = vld [vmem:[%s1872_s29 + $0x50] sm:$0xff] }
  0x6b   : > { %517 = vmatmul.bf16.gmra.mxu0 %v1639_v24  ;;  %695 = vmatmul.bf16.gmra.mxu1 %v1652_v25 }
  0x6c   : > { %899 = vmatmul.bf16.gmra.mxu2 %v1665_v26  ;;  %1103 = vmatmul.bf16.gmra.mxu3 %v1678_v27 }
  0x7b   : > { %522 = vmatmul.bf16.gmra.mxu0 %v1640_v28  ;;  %700 = vmatmul.bf16.gmra.mxu1 %v1653_v29 }
  0x7c   : > { %904 = vmatmul.bf16.gmra.mxu2 %v1666_v30  ;;  %1108 = vmatmul.bf16.gmra.mxu3 %v1679_v31 }
  0x8b   : > { %527 = vmatmul.bf16.gmra.mxu0 %v1641_v32  ;;  %705 = vmatmul.bf16.gmra.mxu1 %v1654_v33 }
  0x8c   : > { %909 = vmatmul.bf16.gmra.mxu2 %v1667_v34  ;;  %1113 = vmatmul.bf16.gmra.mxu3 %v1680_v35 }
  0x9b   : > { %532 = vmatmul.bf16.gmra.mxu0 %v1642_v36  ;;  %710 = vmatmul.bf16.gmra.mxu1 %v1655_v37 }
  0x9c   : > { %914 = vmatmul.bf16.gmra.mxu2 %v1668_v38  ;;  %1118 = vmatmul.bf16.gmra.mxu3 %v1681_v39  ;;  %v1646_v39 = vld [vmem:[%s1854_s19 + $0x58] sm:$0xff] }
  0xa8   : > { %v498_v42 = vpop.f32.mrf.mxu0  ;;  %v676_v43 = vpop.f32.mrf.mxu1 }
  0xa9   : > { %v741_v46 = vmax.f32 %v498_v42, %v676_v43 }
  0xab   : > { %537 = vmatmul.bf16.gmra.mxu0 %v1643_v40  ;;  %715 = vmatmul.bf16.gmra.mxu1 %v1656_v41  ;;  %v1659_v40 = vld [vmem:[%s1860_s23 + $0x58] sm:$0xff] }
  0xac   : > { %919 = vmatmul.bf16.gmra.mxu2 %v1669_v44  ;;  %1123 = vmatmul.bf16.gmra.mxu3 %v1682_v45  ;;  %v1672_v44 = vld [vmem:[%s1866_s26 + $0x58] sm:$0xff] }
  0xad   : > { %v1685_v45 = vld [vmem:[%s1872_s29 + $0x58] sm:$0xff] }
  0xaf   : > { %v880_v47 = vpop.f32.mrf.mxu2  ;;  %v1084_v48 = vpop.f32.mrf.mxu3 }
  0xb0   : > { %v500_v49 = vpop.f32.mrf.mxu0  ;;  %v678_v50 = vpop.f32.mrf.mxu1  ;;  %v945_v51 = vmax.f32 %v741_v46, %v880_v47 }
  0xb1   : > { %v742_v54 = vmax.f32 %v500_v49, %v678_v50 }
  0xb2   : > { %v1149_v52 = vmax.f32 %v945_v51, %v1084_v48 }
  0xb4   : > { %v1179_v0 = vadd.f32 %v1913_v53, %v1149_v52 }
  0xb6   : > { %v1205_v3 = vmax.f32 %v1179_v0, 0.0  ;;  %v1660_v0 = vld [vmem:[%s1860_s23 + $0x60] sm:$0xff] }
  0xb7   : > { %v882_v55 = vpop.f32.mrf.mxu2  ;;  %v1086_v56 = vpop.f32.mrf.mxu3 }
  0xb8   : > { %v946_v59 = vmax.f32 %v742_v54, %v882_v55  ;;  %v503_v60 = vpop.f32.mrf.mxu0  ;;  %v681_v61 = vpop.f32.mrf.mxu1 }
  0xb9   : > { %v743_v5 = vmax.f32 %v503_v60, %v681_v61 }
  0xba   : > { %v1150_v1 = vmax.f32 %v946_v59, %v1086_v56 }
  0xbb   : > { %542 = vmatmul.bf16.gmra.mxu0 %v1644_v57  ;;  %720 = vmatmul.bf16.gmra.mxu1 %v1657_v58 }
  0xbc   : > { %v1180_v2 = vadd.f32 %v1913_v53, %v1150_v1  ;;  %924 = vmatmul.bf16.gmra.mxu2 %v1670_v62  ;;  %1128 = vmatmul.bf16.gmra.mxu3 %v1683_v63  ;;  %v1647_v63 = vld [vmem:[%s1854_s19 + $0x60] sm:$0xff] }
  0xbe   : > { %v1206_v4 = vmax.f32 %v1180_v2, 0.0 }
  0xbf   : > { %v885_v6 = vpop.f32.mrf.mxu2  ;;  %v1089_v7 = vpop.f32.mrf.mxu3 }
  0xc0   : > { %v1690_v8 = vpack.c.bf16 %v1206_v4, %v1205_v3  ;;  %v505_v9 = vpop.f32.mrf.mxu0  ;;  %v683_v10 = vpop.f32.mrf.mxu1  ;;  %v947_v11 = vmax.f32 %v743_v5, %v885_v6  ;;  %v1673_v4 = vld [vmem:[%s1866_s26 + $0x60] sm:$0xff] }
  0xc1   : > { %v744_v13 = vmax.f32 %v505_v9, %v683_v10  ;;  %v1686_v5 = vld [vmem:[%s1872_s29 + $0x60] sm:$0xff] }
  0xc2   : > { %1691 = vst [vmem:[%s1925_s10] sm:$0xff] %v1690_v8   ;;  %v1151_v12 = vmax.f32 %v947_v11, %v1089_v7 }
  0xc4   : > { %v1181_v23 = vadd.f32 %v1913_v53, %v1151_v12 }
  0xc6   : > { %v1207_v26 = vmax.f32 %v1181_v23, 0.0 }
  0xc7   : > { %v887_v14 = vpop.f32.mrf.mxu2  ;;  %v1091_v15 = vpop.f32.mrf.mxu3 }
  0xc8   : > { %v948_v18 = vmax.f32 %v744_v13, %v887_v14  ;;  %v508_v19 = vpop.f32.mrf.mxu0  ;;  %v686_v20 = vpop.f32.mrf.mxu1 }
  0xc9   : > { %v745_v28 = vmax.f32 %v508_v19, %v686_v20 }
  0xca   : > { %v1152_v24 = vmax.f32 %v948_v18, %v1091_v15 }
  0xcb   : > { %547 = vmatmul.bf16.gmra.mxu0 %v1645_v16  ;;  %725 = vmatmul.bf16.gmra.mxu1 %v1658_v17 }
  0xcc   : > { %v1182_v25 = vadd.f32 %v1913_v53, %v1152_v24  ;;  %929 = vmatmul.bf16.gmra.mxu2 %v1671_v21  ;;  %1133 = vmatmul.bf16.gmra.mxu3 %v1684_v22 }
  0xce   : > { %v1208_v27 = vmax.f32 %v1182_v25, 0.0 }
  0xcf   : > { %v890_v29 = vpop.f32.mrf.mxu2  ;;  %v1094_v30 = vpop.f32.mrf.mxu3 }
  0xd0   : > { %v1695_v31 = vpack.c.bf16 %v1208_v27, %v1207_v26  ;;  %v510_v32 = vpop.f32.mrf.mxu0  ;;  %v688_v33 = vpop.f32.mrf.mxu1  ;;  %v949_v34 = vmax.f32 %v745_v28, %v890_v29 }
  0xd1   : > { %v746_v36 = vmax.f32 %v510_v32, %v688_v33 }
  0xd2   : > { %1752 = vst [vmem:[%s1925_s10 + $0x8] sm:$0xff] %v1695_v31   ;;  %v1153_v35 = vmax.f32 %v949_v34, %v1094_v30 }
  0xd4   : > { %v1183_v46 = vadd.f32 %v1913_v53, %v1153_v35 }
  0xd6   : > { %v1209_v49 = vmax.f32 %v1183_v46, 0.0 }
  0xd7   : > { %v892_v37 = vpop.f32.mrf.mxu2  ;;  %v1096_v38 = vpop.f32.mrf.mxu3 }
  0xd8   : > { %v950_v41 = vmax.f32 %v746_v36, %v892_v37  ;;  %v513_v42 = vpop.f32.mrf.mxu0  ;;  %v691_v43 = vpop.f32.mrf.mxu1 }
  0xd9   : > { %v747_v51 = vmax.f32 %v513_v42, %v691_v43 }
  0xda   : > { %v1154_v47 = vmax.f32 %v950_v41, %v1096_v38 }
  0xdb   : > { %552 = vmatmul.bf16.gmra.mxu0 %v1646_v39  ;;  %730 = vmatmul.bf16.gmra.mxu1 %v1659_v40 }
  0xdc   : > { %v1184_v48 = vadd.f32 %v1913_v53, %v1154_v47  ;;  %934 = vmatmul.bf16.gmra.mxu2 %v1672_v44  ;;  %1138 = vmatmul.bf16.gmra.mxu3 %v1685_v45 }
  0xde   : > { %v1210_v50 = vmax.f32 %v1184_v48, 0.0 }
  0xdf   : > { %v895_v52 = vpop.f32.mrf.mxu2  ;;  %v1099_v54 = vpop.f32.mrf.mxu3 }
  0xe0   : > { %v1700_v55 = vpack.c.bf16 %v1210_v50, %v1209_v49  ;;  %v515_v56 = vpop.f32.mrf.mxu0  ;;  %v693_v57 = vpop.f32.mrf.mxu1  ;;  %v951_v58 = vmax.f32 %v747_v51, %v895_v52 }
  0xe1   : > { %v748_v60 = vmax.f32 %v515_v56, %v693_v57 }
  0xe2   : > { %1753 = vst [vmem:[%s1925_s10 + $0x10] sm:$0xff] %v1700_v55   ;;  %v1155_v59 = vmax.f32 %v951_v58, %v1099_v54 }
  0xe4   : > { %v1185_v6 = vadd.f32 %v1913_v53, %v1155_v59 }
  0xe6   : > { %v1211_v9 = vmax.f32 %v1185_v6, 0.0 }
  0xe7   : > { %v897_v61 = vpop.f32.mrf.mxu2  ;;  %v1101_v62 = vpop.f32.mrf.mxu3 }
  0xe8   : > { %v952_v1 = vmax.f32 %v748_v60, %v897_v61  ;;  %v518_v2 = vpop.f32.mrf.mxu0  ;;  %v696_v3 = vpop.f32.mrf.mxu1 }
  0xe9   : > { %v749_v11 = vmax.f32 %v518_v2, %v696_v3 }
  0xea   : > { %v1156_v7 = vmax.f32 %v952_v1, %v1101_v62 }
  0xeb   : > { %557 = vmatmul.bf16.gmra.mxu0 %v1647_v63  ;;  %735 = vmatmul.bf16.gmra.mxu1 %v1660_v0 }
  0xec   : > { %v1186_v8 = vadd.f32 %v1913_v53, %v1156_v7  ;;  %939 = vmatmul.bf16.gmra.mxu2 %v1673_v4  ;;  %1143 = vmatmul.bf16.gmra.mxu3 %v1686_v5 }
  0xee   : > { %v1212_v10 = vmax.f32 %v1186_v8, 0.0 }
  0xef   : > { %v900_v12 = vpop.f32.mrf.mxu2  ;;  %v1104_v13 = vpop.f32.mrf.mxu3 }
  0xf0   : > { %v1705_v14 = vpack.c.bf16 %v1212_v10, %v1211_v9  ;;  %v520_v15 = vpop.f32.mrf.mxu0  ;;  %v698_v16 = vpop.f32.mrf.mxu1  ;;  %v953_v17 = vmax.f32 %v749_v11, %v900_v12 }
  0xf1   : > { %v750_v19 = vmax.f32 %v520_v15, %v698_v16 }
  0xf2   : > { %1754 = vst [vmem:[%s1925_s10 + $0x18] sm:$0xff] %v1705_v14   ;;  %v1157_v18 = vmax.f32 %v953_v17, %v1104_v13 }
  0xf4   : > { %v1187_v25 = vadd.f32 %v1913_v53, %v1157_v18 }
  0xf6   : > { %v1213_v28 = vmax.f32 %v1187_v25, 0.0 }
  0xf7   : > { %v902_v20 = vpop.f32.mrf.mxu2  ;;  %v1106_v21 = vpop.f32.mrf.mxu3 }
  0xf8   : > { %v954_v22 = vmax.f32 %v750_v19, %v902_v20  ;;  %v523_v23 = vpop.f32.mrf.mxu0  ;;  %v701_v24 = vpop.f32.mrf.mxu1 }
  0xf9   : > { %v751_v30 = vmax.f32 %v523_v23, %v701_v24 }
  0xfa   : > { %v1158_v26 = vmax.f32 %v954_v22, %v1106_v21 }
  0xfc   : > { %v1188_v27 = vadd.f32 %v1913_v53, %v1158_v26 }
  0xfe   : > { %v1214_v29 = vmax.f32 %v1188_v27, 0.0 }
  0xff   : > { %v905_v31 = vpop.f32.mrf.mxu2  ;;  %v1109_v32 = vpop.f32.mrf.mxu3 }
 0x100   : > { %v1710_v33 = vpack.c.bf16 %v1214_v29, %v1213_v28  ;;  %v525_v34 = vpop.f32.mrf.mxu0  ;;  %v703_v35 = vpop.f32.mrf.mxu1  ;;  %v955_v36 = vmax.f32 %v751_v30, %v905_v31 }
 0x101   : > { %v752_v38 = vmax.f32 %v525_v34, %v703_v35 }
 0x102   : > { %1755 = vst [vmem:[%s1925_s10 + $0x20] sm:$0xff] %v1710_v33   ;;  %v1159_v37 = vmax.f32 %v955_v36, %v1109_v32 }
 0x104   : > { %v1189_v44 = vadd.f32 %v1913_v53, %v1159_v37 }
 0x106   : > { %v1215_v47 = vmax.f32 %v1189_v44, 0.0 }
 0x107   : > { %v907_v39 = vpop.f32.mrf.mxu2  ;;  %v1111_v40 = vpop.f32.mrf.mxu3 }
 0x108   : > { %v956_v41 = vmax.f32 %v752_v38, %v907_v39  ;;  %v528_v42 = vpop.f32.mrf.mxu0  ;;  %v706_v43 = vpop.f32.mrf.mxu1 }
 0x109   : > { %v753_v49 = vmax.f32 %v528_v42, %v706_v43 }
 0x10a   : > { %v1160_v45 = vmax.f32 %v956_v41, %v1111_v40 }
 0x10c   : > { %v1190_v46 = vadd.f32 %v1913_v53, %v1160_v45 }
 0x10e   : > { %v1216_v48 = vmax.f32 %v1190_v46, 0.0 }
 0x10f   : > { %v910_v50 = vpop.f32.mrf.mxu2  ;;  %v1114_v51 = vpop.f32.mrf.mxu3 }
 0x110   : > { %v1715_v52 = vpack.c.bf16 %v1216_v48, %v1215_v47  ;;  %v530_v54 = vpop.f32.mrf.mxu0  ;;  %v708_v55 = vpop.f32.mrf.mxu1  ;;  %v957_v56 = vmax.f32 %v753_v49, %v910_v50 }
 0x111   : > { %v754_v58 = vmax.f32 %v530_v54, %v708_v55 }
 0x112   : > { %1756 = vst [vmem:[%s1925_s10 + $0x28] sm:$0xff] %v1715_v52   ;;  %v1161_v57 = vmax.f32 %v957_v56, %v1114_v51 }
 0x114   : > { %v1191_v0 = vadd.f32 %v1913_v53, %v1161_v57 }
 0x116   : > { %v1217_v3 = vmax.f32 %v1191_v0, 0.0 }
 0x117   : > { %v912_v59 = vpop.f32.mrf.mxu2  ;;  %v1116_v60 = vpop.f32.mrf.mxu3 }
 0x118   : > { %v958_v61 = vmax.f32 %v754_v58, %v912_v59  ;;  %v533_v62 = vpop.f32.mrf.mxu0  ;;  %v711_v63 = vpop.f32.mrf.mxu1 }
 0x119   : > { %v755_v5 = vmax.f32 %v533_v62, %v711_v63 }
 0x11a   : > { %v1162_v1 = vmax.f32 %v958_v61, %v1116_v60 }
 0x11c   : > { %v1192_v2 = vadd.f32 %v1913_v53, %v1162_v1 }
 0x11e   : > { %v1218_v4 = vmax.f32 %v1192_v2, 0.0 }
 0x11f   : > { %v915_v6 = vpop.f32.mrf.mxu2  ;;  %v1119_v7 = vpop.f32.mrf.mxu3 }
 0x120   : > { %v1720_v8 = vpack.c.bf16 %v1218_v4, %v1217_v3  ;;  %v535_v9 = vpop.f32.mrf.mxu0  ;;  %v713_v10 = vpop.f32.mrf.mxu1  ;;  %v959_v11 = vmax.f32 %v755_v5, %v915_v6 }
 0x121   : > { %v756_v13 = vmax.f32 %v535_v9, %v713_v10 }
 0x122   : > { %1757 = vst [vmem:[%s1925_s10 + $0x30] sm:$0xff] %v1720_v8   ;;  %v1163_v12 = vmax.f32 %v959_v11, %v1119_v7 }
 0x124   : > { %v1193_v19 = vadd.f32 %v1913_v53, %v1163_v12 }
 0x126   : > { %v1219_v22 = vmax.f32 %v1193_v19, 0.0 }
 0x127   : > { %v917_v14 = vpop.f32.mrf.mxu2  ;;  %v1121_v15 = vpop.f32.mrf.mxu3 }
 0x128   : > { %v960_v16 = vmax.f32 %v756_v13, %v917_v14  ;;  %v538_v17 = vpop.f32.mrf.mxu0  ;;  %v716_v18 = vpop.f32.mrf.mxu1 }
 0x129   : > { %v757_v24 = vmax.f32 %v538_v17, %v716_v18 }
 0x12a   : > { %v1164_v20 = vmax.f32 %v960_v16, %v1121_v15 }
 0x12c   : > { %v1194_v21 = vadd.f32 %v1913_v53, %v1164_v20 }
 0x12e   : > { %v1220_v23 = vmax.f32 %v1194_v21, 0.0 }
 0x12f   : > { %v920_v25 = vpop.f32.mrf.mxu2  ;;  %v1124_v26 = vpop.f32.mrf.mxu3 }
 0x130   : > { %v1725_v27 = vpack.c.bf16 %v1220_v23, %v1219_v22  ;;  %v540_v28 = vpop.f32.mrf.mxu0  ;;  %v718_v29 = vpop.f32.mrf.mxu1  ;;  %v961_v30 = vmax.f32 %v757_v24, %v920_v25 }
 0x131   : > { %v758_v32 = vmax.f32 %v540_v28, %v718_v29 }
 0x132   : > { %1758 = vst [vmem:[%s1925_s10 + $0x38] sm:$0xff] %v1725_v27   ;;  %v1165_v31 = vmax.f32 %v961_v30, %v1124_v26 }
 0x134   : > { %v1195_v38 = vadd.f32 %v1913_v53, %v1165_v31 }
 0x136   : > { %v1221_v41 = vmax.f32 %v1195_v38, 0.0 }
 0x137   : > { %v922_v33 = vpop.f32.mrf.mxu2  ;;  %v1126_v34 = vpop.f32.mrf.mxu3 }
 0x138   : > { %v962_v35 = vmax.f32 %v758_v32, %v922_v33  ;;  %v543_v36 = vpop.f32.mrf.mxu0  ;;  %v721_v37 = vpop.f32.mrf.mxu1 }
 0x139   : > { %v759_v43 = vmax.f32 %v543_v36, %v721_v37 }
 0x13a   : > { %v1166_v39 = vmax.f32 %v962_v35, %v1126_v34 }
 0x13c   : > { %v1196_v40 = vadd.f32 %v1913_v53, %v1166_v39 }
 0x13e   : > { %v1222_v42 = vmax.f32 %v1196_v40, 0.0 }
 0x13f   : > { %v925_v44 = vpop.f32.mrf.mxu2  ;;  %v1129_v45 = vpop.f32.mrf.mxu3 }
 0x140   : > { %v1730_v46 = vpack.c.bf16 %v1222_v42, %v1221_v41  ;;  %v545_v47 = vpop.f32.mrf.mxu0  ;;  %v723_v48 = vpop.f32.mrf.mxu1  ;;  %v963_v49 = vmax.f32 %v759_v43, %v925_v44 }
 0x141   : > { %v760_v51 = vmax.f32 %v545_v47, %v723_v48 }
 0x142   : > { %1759 = vst [vmem:[%s1925_s10 + $0x40] sm:$0xff] %v1730_v46   ;;  %v1167_v50 = vmax.f32 %v963_v49, %v1129_v45 }
 0x144   : > { %v1197_v58 = vadd.f32 %v1913_v53, %v1167_v50 }
 0x146   : > { %v1223_v61 = vmax.f32 %v1197_v58, 0.0 }
 0x147   : > { %v927_v52 = vpop.f32.mrf.mxu2  ;;  %v1131_v54 = vpop.f32.mrf.mxu3 }
 0x148   : > { %v964_v55 = vmax.f32 %v760_v51, %v927_v52  ;;  %v548_v56 = vpop.f32.mrf.mxu0  ;;  %v726_v57 = vpop.f32.mrf.mxu1 }
 0x149   : > { %v761_v63 = vmax.f32 %v548_v56, %v726_v57 }
 0x14a   : > { %v1168_v59 = vmax.f32 %v964_v55, %v1131_v54 }
 0x14c   : > { %v1198_v60 = vadd.f32 %v1913_v53, %v1168_v59 }
 0x14e   : > { %v1224_v62 = vmax.f32 %v1198_v60, 0.0 }
 0x14f   : > { %v930_v0 = vpop.f32.mrf.mxu2  ;;  %v1134_v1 = vpop.f32.mrf.mxu3 }
 0x150   : > { %v1735_v2 = vpack.c.bf16 %v1224_v62, %v1223_v61  ;;  %v550_v3 = vpop.f32.mrf.mxu0  ;;  %v728_v4 = vpop.f32.mrf.mxu1  ;;  %v965_v5 = vmax.f32 %v761_v63, %v930_v0 }
 0x151   : > { %v762_v7 = vmax.f32 %v550_v3, %v728_v4 }
 0x152   : > { %1760 = vst [vmem:[%s1925_s10 + $0x48] sm:$0xff] %v1735_v2   ;;  %v1169_v6 = vmax.f32 %v965_v5, %v1134_v1 }
 0x154   : > { %v1199_v13 = vadd.f32 %v1913_v53, %v1169_v6 }
 0x156   : > { %v1225_v16 = vmax.f32 %v1199_v13, 0.0 }
 0x157   : > { %v932_v8 = vpop.f32.mrf.mxu2  ;;  %v1136_v9 = vpop.f32.mrf.mxu3 }
 0x158   : > { %v966_v10 = vmax.f32 %v762_v7, %v932_v8  ;;  %v553_v11 = vpop.f32.mrf.mxu0  ;;  %v731_v12 = vpop.f32.mrf.mxu1 }
 0x159   : > { %v763_v18 = vmax.f32 %v553_v11, %v731_v12 }
 0x15a   : > { %v1170_v14 = vmax.f32 %v966_v10, %v1136_v9 }
 0x15c   : > { %v1200_v15 = vadd.f32 %v1913_v53, %v1170_v14 }
 0x15e   : > { %v1226_v17 = vmax.f32 %v1200_v15, 0.0 }
 0x15f   : > { %v935_v19 = vpop.f32.mrf.mxu2  ;;  %v1139_v20 = vpop.f32.mrf.mxu3 }
 0x160   : > { %v1740_v21 = vpack.c.bf16 %v1226_v17, %v1225_v16  ;;  %v555_v22 = vpop.f32.mrf.mxu0  ;;  %v733_v23 = vpop.f32.mrf.mxu1  ;;  %v967_v24 = vmax.f32 %v763_v18, %v935_v19 }
 0x161   : > { %v764_v26 = vmax.f32 %v555_v22, %v733_v23 }
 0x162   : > { %1761 = vst [vmem:[%s1925_s10 + $0x50] sm:$0xff] %v1740_v21   ;;  %v1171_v25 = vmax.f32 %v967_v24, %v1139_v20 }
 0x164   : > { %v1201_v32 = vadd.f32 %v1913_v53, %v1171_v25 }
 0x166   : > { %v1227_v35 = vmax.f32 %v1201_v32, 0.0 }
 0x167   : > { %v937_v27 = vpop.f32.mrf.mxu2  ;;  %v1141_v28 = vpop.f32.mrf.mxu3 }
 0x168   : > { %v968_v29 = vmax.f32 %v764_v26, %v937_v27  ;;  %v558_v30 = vpop.f32.mrf.mxu0  ;;  %v736_v31 = vpop.f32.mrf.mxu1 }
 0x169   : > { %v765_v37 = vmax.f32 %v558_v30, %v736_v31 }
 0x16a   : > { %v1172_v33 = vmax.f32 %v968_v29, %v1141_v28 }
 0x16c   : > { %v1202_v34 = vadd.f32 %v1913_v53, %v1172_v33 }
 0x16e   : > { %v1228_v36 = vmax.f32 %v1202_v34, 0.0 }
 0x16f   : > { %v940_v38 = vpop.f32.mrf.mxu2  ;;  %v1144_v39 = vpop.f32.mrf.mxu3 }
 0x170   : > { %v1745_v40 = vpack.c.bf16 %v1228_v36, %v1227_v35  ;;  %v969_v41 = vmax.f32 %v765_v37, %v940_v38  ;;  %v560_v42 = vpop.f32.mrf.mxu0  ;;  %v738_v43 = vpop.f32.mrf.mxu1 }
 0x171   : > { %v766_v45 = vmax.f32 %v560_v42, %v738_v43 }
 0x172   : > { %1762 = vst [vmem:[%s1925_s10 + $0x58] sm:$0xff] %v1745_v40   ;;  %v1173_v44 = vmax.f32 %v969_v41, %v1144_v39 }
 0x174   : > { %v1203_v49 = vadd.f32 %v1913_v53, %v1173_v44 }
 0x176   : > { %v1229_v52 = vmax.f32 %v1203_v49, 0.0 }
 0x177   : > { %v942_v46 = vpop.f32.mrf.mxu2  ;;  %v1146_v48 = vpop.f32.mrf.mxu3 }
 0x178   : > { %v970_v47 = vmax.f32 %v766_v45, %v942_v46 }
 0x17a   : > { %v1174_v50 = vmax.f32 %v970_v47, %v1146_v48 }
 0x17c   : > { %v1204_v51 = vadd.f32 %v1913_v53, %v1174_v50 }
 0x17e   : > { %v1230_v54 = vmax.f32 %v1204_v51, 0.0 }
 0x180   : > { %v1750_v55 = vpack.c.bf16 %v1230_v54, %v1229_v52 }
 0x182   : > { %1763 = vst [vmem:[%s1925_s10 + $0x60] sm:$0xff] %v1750_v55  }
 0x183 PF: > { %s16_s21 = sadd.s32 1, %s1779_s21  }
 0x184   : > { %p13_p4 = scmp.ge.s32.totalorder %s16_s21, 4  }
 0x186   :  { %15 = sbr.rel (!%p13_p4) target bundleno = 1 (0x1), region = 83 }

// kernel: cnn_forward.4
= control target key start
LH: loop header
LB: loop body
LE: loop exit
PB: predicated region body
PF: predicated region fallthrough
CT: control target
= control target key end

     0   :  { %s1081_s21 = smov 0   ;;  %s1284_s0 = inlined_call_operand.vmem [shape: bf16[64,256], index: 0, kind: input, shape index: {}]   ;;  %s1285_s1 = inlined_call_operand.vmem [shape: bf16[64,256], index: 1, kind: input, shape index: {}]   ;;  %s1286_s2 = inlined_call_operand.vmem [shape: bf16[64,256], index: 2, kind: input, shape index: {}]   ;;  %s1287_s3 = inlined_call_operand.vmem [shape: bf16[64,256], index: 3, kind: input, shape index: {}]   ;;  %s1288_s4 = inlined_call_operand.vmem [shape: bf16[256,128], index: 4, kind: input, shape index: {}]   ;;  %s1289_s5 = inlined_call_operand.vmem [shape: f32[1,128], index: 5, kind: input, shape index: {}]   ;;  %s1290_s6 = inlined_call_operand.vmem [shape: bf16[64,128], index: 6, kind: output, shape index: {}]  }
   0x1 LB: > { %s833_s22 = sadd.s32 4294967295, %s1044_s21   ;;  %p837_p0 = scmp.ge.s32.totalorder %s1044_s21, 1  ;;  %s1044_s21 = sphi %s1081_s21, %s16_s21  }
   0x2   : > { %p250_p1 = scmp.lt.s32.totalorder %s1044_s21, 3 }
   0x4   : > { %p251_p2 = pnand %p837_p0, %p250_p1 }
   0x5   : > { %s838_s11 = sshll.u32 (!%p251_p2), %s833_s22, 2 }
   0x6   : > { %254 = sbr.rel (%p251_p2) target bundleno = 245 (0xf5), region = 44  ;;  %p300_p3 = scmp.lt.s32.totalorder (!%p251_p2), %s838_s11, 7 }
   0xb   : > { %v1092_v0 = vld [vmem:[%s1288_s4 + $0x38] sm:$0xff]  ;;  %v1104_v2 = vld [vmem:[%s1288_s4 + $0x30] sm:$0xff]  ;;  %v1118_v4 = vld [vmem:[%s1288_s4 + $0x28] sm:$0xff]  ;;  %s1292_s11 = smov (!%p300_p3, %s838_s11), 7 }
   0xc   : > { %v1097_v1 = vld [vmem:[%s1288_s4 + $0x78] sm:$0xff]  ;;  %485 = vmatpush.bf16.msra.mxu0 %v1092_v0  ;;  %v1109_v3 = vld [vmem:[%s1288_s4 + $0x70] sm:$0xff]  ;;  %547 = vmatpush.bf16.msra.mxu2 %v1092_v0  ;;  %v1123_v5 = vld [vmem:[%s1288_s4 + $0x68] sm:$0xff]  ;;  %s1172_s25 = sshll.u32 %s1292_s11, 3  ;;  %s851_s26 = sshll.u32 %s1292_s11, 2 }
   0xd   : > { %504 = vmatpush.bf16.msra.mxu1 %v1097_v1  ;;  %566 = vmatpush.bf16.msra.mxu3 %v1097_v1  ;;  %v1132_v6 = vld [vmem:[%s1288_s4 + $0x20] sm:$0xff]  ;;  %v1146_v8 = vld [vmem:[%s1288_s4 + $0x18] sm:$0xff]  ;;  %v1162_v10 = vld [vmem:[%s1288_s4 + $0x10] sm:$0xff]  ;;  %s1190_s8 = scalar_lea.vmem %s1284_s0, %s1172_s25  ;;  %s1198_s12 = scalar_lea.vmem %s1285_s1, %s1172_s25 }
   0xe   : > { %v1137_v7 = vld [vmem:[%s1288_s4 + $0x60] sm:$0xff]  ;;  %v1151_v9 = vld [vmem:[%s1288_s4 + $0x58] sm:$0xff]  ;;  %v1167_v11 = vld [vmem:[%s1288_s4 + $0x50] sm:$0xff]  ;;  %s318_s19 = scalar_lea.vmem %s1286_s2, %s1172_s25  ;;  %s325_s23 = scalar_lea.vmem %s1287_s3, %s1172_s25 }
   0xf   : > { %v1179_v12 = vld [vmem:[%s1288_s4 + $0x8] sm:$0xff]  ;;  %v1203_v14 = vld [vmem:[%s1288_s4] sm:$0xff]  ;;  %v862_v28 = vld [vmem:[%s1190_s8 + $0x10] sm:$0xf]  ;;  %s331_s29 = scalar_lea.vmem %s1290_s6, %s851_s26 }
  0x10   : > { %486 = vmatpush.bf16.msra.mxu0 %v1104_v2  ;;  %548 = vmatpush.bf16.msra.mxu2 %v1104_v2  ;;  %v1184_v13 = vld [vmem:[%s1288_s4 + $0x48] sm:$0xff]  ;;  %v1208_v15 = vld [vmem:[%s1288_s4 + $0x40] sm:$0xff]  ;;  %v1005_v29 = vld [vmem:[%s1190_s8 + $0x14] sm:$0xf0] }
  0x11   : > { %505 = vmatpush.bf16.msra.mxu1 %v1109_v3  ;;  %567 = vmatpush.bf16.msra.mxu3 %v1109_v3  ;;  %v854_v16 = vld [vmem:[%s1190_s8] sm:$0xf]  ;;  %v1003_v17 = vld [vmem:[%s1190_s8 + $0x4] sm:$0xf0]  ;;  %v1002_v18 = vld [vmem:[%s1190_s8 + $0x4] sm:$0xf]  ;;  %v863_v36 = vor.u32 %v1005_v29, %v862_v28 }
  0x12   : > { %v856_v19 = vld [vmem:[%s1190_s8 + $0x8] sm:$0xf0]  ;;  %v934_v20 = vld [vmem:[%s1198_s12] sm:$0xf]  ;;  %v1007_v21 = vld [vmem:[%s1198_s12 + $0x4] sm:$0xf0]  ;;  %v855_v24 = vor.u32 %v1003_v17, %v854_v16 }
  0x13   : > { %v1006_v22 = vld [vmem:[%s1198_s12 + $0x4] sm:$0xf]  ;;  %v936_v23 = vld [vmem:[%s1198_s12 + $0x8] sm:$0xf0]  ;;  %v859_v25 = vor.u32 %v1002_v18, %v856_v19  ;;  %v935_v26 = vor.u32 %v1007_v21, %v934_v20  ;;  %v1004_v30 = vld [vmem:[%s1190_s8 + $0x14] sm:$0xf] }
  0x14   : > { %487 = vmatpush.bf16.msra.mxu0 %v1118_v4  ;;  %549 = vmatpush.bf16.msra.mxu2 %v1118_v4  ;;  %v939_v27 = vor.u32 %v1006_v22, %v936_v23  ;;  %v864_v31 = vld [vmem:[%s1190_s8 + $0x18] sm:$0xf0]  ;;  %v942_v32 = vld [vmem:[%s1198_s12 + $0x10] sm:$0xf]  ;;  %v1009_v33 = vld [vmem:[%s1198_s12 + $0x14] sm:$0xf0] }
  0x15   : > { %506 = vmatpush.bf16.msra.mxu1 %v1123_v5  ;;  %568 = vmatpush.bf16.msra.mxu3 %v1123_v5  ;;  %v1008_v34 = vld [vmem:[%s1198_s12 + $0x14] sm:$0xf]  ;;  %v944_v35 = vld [vmem:[%s1198_s12 + $0x18] sm:$0xf0]  ;;  %v867_v37 = vor.u32 %v1004_v30, %v864_v31  ;;  %v943_v38 = vor.u32 %v1009_v33, %v942_v32  ;;  %v950_v40 = vld [vmem:[%s318_s19] sm:$0xf] }
  0x16   : > { %v947_v39 = vor.u32 %v1008_v34, %v944_v35  ;;  %v1011_v41 = vld [vmem:[%s318_s19 + $0x4] sm:$0xf0]  ;;  %v1010_v42 = vld [vmem:[%s318_s19 + $0x4] sm:$0xf]  ;;  %v952_v43 = vld [vmem:[%s318_s19 + $0x8] sm:$0xf0] }
  0x17   : > { %v966_v44 = vld [vmem:[%s325_s23] sm:$0xf]  ;;  %v1015_v45 = vld [vmem:[%s325_s23 + $0x4] sm:$0xf0]  ;;  %v1014_v46 = vld [vmem:[%s325_s23 + $0x4] sm:$0xf]  ;;  %v951_v48 = vor.u32 %v1011_v41, %v950_v40  ;;  %v955_v49 = vor.u32 %v1010_v42, %v952_v43 }
  0x18   : > { %488 = vmatpush.bf16.msra.mxu0 %v1132_v6  ;;  %550 = vmatpush.bf16.msra.mxu2 %v1132_v6  ;;  %v968_v47 = vld [vmem:[%s325_s23 + $0x8] sm:$0xf0]  ;;  %v967_v50 = vor.u32 %v1015_v45, %v966_v44  ;;  %v958_v52 = vld [vmem:[%s318_s19 + $0x10] sm:$0xf]  ;;  %v1013_v53 = vld [vmem:[%s318_s19 + $0x14] sm:$0xf0] }
  0x19   : > { %507 = vmatpush.bf16.msra.mxu1 %v1137_v7  ;;  %569 = vmatpush.bf16.msra.mxu3 %v1137_v7  ;;  %v971_v51 = vor.u32 %v1014_v46, %v968_v47  ;;  %v1012_v54 = vld [vmem:[%s318_s19 + $0x14] sm:$0xf]  ;;  %v960_v55 = vld [vmem:[%s318_s19 + $0x18] sm:$0xf0]  ;;  %v974_v56 = vld [vmem:[%s325_s23 + $0x10] sm:$0xf]  ;;  %v959_v60 = vor.u32 %v1013_v53, %v958_v52 }
  0x1a   : > { %v1017_v57 = vld [vmem:[%s325_s23 + $0x14] sm:$0xf0]  ;;  %v1016_v58 = vld [vmem:[%s325_s23 + $0x14] sm:$0xf]  ;;  %v976_v59 = vld [vmem:[%s325_s23 + $0x18] sm:$0xf0]  ;;  %v963_v61 = vor.u32 %v1012_v54, %v960_v55 }
  0x1b   : > { %v975_v62 = vor.u32 %v1017_v57, %v974_v56  ;;  %v979_v63 = vor.u32 %v1016_v58, %v976_v59  ;;  %v1037_v33 = vld [vmem:[%s1289_s5] ss:$0 sm:$0xff] }
  0x1c   : > { %489 = vmatpush.bf16.msra.mxu0 %v1146_v8  ;;  %551 = vmatpush.bf16.msra.mxu2 %v1146_v8 }
  0x1d   : > { %508 = vmatpush.bf16.msra.mxu1 %v1151_v9  ;;  %570 = vmatpush.bf16.msra.mxu3 %v1151_v9 }
  0x20   : > { %490 = vmatpush.bf16.msra.mxu0 %v1162_v10  ;;  %552 = vmatpush.bf16.msra.mxu2 %v1162_v10 }
  0x21   : > { %509 = vmatpush.bf16.msra.mxu1 %v1167_v11  ;;  %571 = vmatpush.bf16.msra.mxu3 %v1167_v11 }
  0x24   : > { %491 = vmatpush.bf16.msra.mxu0 %v1179_v12  ;;  %553 = vmatpush.bf16.msra.mxu2 %v1179_v12 }
  0x25   : > { %510 = vmatpush.bf16.msra.mxu1 %v1184_v13  ;;  %572 = vmatpush.bf16.msra.mxu3 %v1184_v13 }
  0x28   : > { %492 = vmatpush.bf16.msra.mxu0 %v1203_v14  ;;  %554 = vmatpush.bf16.msra.mxu2 %v1203_v14 }
  0x29   : > { %511 = vmatpush.bf16.msra.mxu1 %v1208_v15  ;;  %573 = vmatpush.bf16.msra.mxu3 %v1208_v15 }
  0x2b   : > { %493 = vmatmul.bf16.vlgmr.msra.gmra.mxu0 %v855_v24  ;;  %555 = vmatmul.bf16.vlgmr.msra.gmra.mxu2 %v935_v26 }
  0x2c   : > { %679 = vmatpush.bf16.msrb.mxu2 %v1092_v0  ;;  %512 = vmatmul.bf16.vlgmr.msra.gmra.mxu1 %v859_v25 }
  0x2d   : > { %698 = vmatpush.bf16.msrb.mxu3 %v1097_v1  ;;  %613 = vmatpush.bf16.msrb.mxu0 %v1092_v0 }
  0x2e   : > { %574 = vmatmul.bf16.vlgmr.msra.gmra.mxu3 %v939_v27  ;;  %632 = vmatpush.bf16.msrb.mxu1 %v1097_v1 }
  0x30   : > { %680 = vmatpush.bf16.msrb.mxu2 %v1104_v2 }
  0x31   : > { %699 = vmatpush.bf16.msrb.mxu3 %v1109_v3  ;;  %614 = vmatpush.bf16.msrb.mxu0 %v1104_v2 }
  0x32   : > { %633 = vmatpush.bf16.msrb.mxu1 %v1109_v3 }
  0x34   : > { %681 = vmatpush.bf16.msrb.mxu2 %v1118_v4 }
  0x35   : > { %700 = vmatpush.bf16.msrb.mxu3 %v1123_v5  ;;  %615 = vmatpush.bf16.msrb.mxu0 %v1118_v4 }
  0x36   : > { %634 = vmatpush.bf16.msrb.mxu1 %v1123_v5 }
  0x38   : > { %682 = vmatpush.bf16.msrb.mxu2 %v1132_v6 }
  0x39   : > { %701 = vmatpush.bf16.msrb.mxu3 %v1137_v7  ;;  %616 = vmatpush.bf16.msrb.mxu0 %v1132_v6 }
  0x3a   : > { %635 = vmatpush.bf16.msrb.mxu1 %v1137_v7 }
  0x3b   : > { %498 = vmatmul.bf16.gmra.mxu0 %v863_v36  ;;  %560 = vmatmul.bf16.gmra.mxu2 %v943_v38 }
  0x3c   : > { %683 = vmatpush.bf16.msrb.mxu2 %v1146_v8  ;;  %517 = vmatmul.bf16.gmra.mxu1 %v867_v37 }
  0x3d   : > { %702 = vmatpush.bf16.msrb.mxu3 %v1151_v9  ;;  %617 = vmatpush.bf16.msrb.mxu0 %v1146_v8 }
  0x3e   : > { %579 = vmatmul.bf16.gmra.mxu3 %v947_v39  ;;  %636 = vmatpush.bf16.msrb.mxu1 %v1151_v9 }
  0x40   : > { %684 = vmatpush.bf16.msrb.mxu2 %v1162_v10 }
  0x41   : > { %703 = vmatpush.bf16.msrb.mxu3 %v1167_v11  ;;  %618 = vmatpush.bf16.msrb.mxu0 %v1162_v10 }
  0x42   : > { %637 = vmatpush.bf16.msrb.mxu1 %v1167_v11 }
  0x44   : > { %685 = vmatpush.bf16.msrb.mxu2 %v1179_v12 }
  0x45   : > { %704 = vmatpush.bf16.msrb.mxu3 %v1184_v13  ;;  %619 = vmatpush.bf16.msrb.mxu0 %v1179_v12 }
  0x46   : > { %638 = vmatpush.bf16.msrb.mxu1 %v1184_v13 }
  0x48   : > { %686 = vmatpush.bf16.msrb.mxu2 %v1203_v14 }
  0x49   : > { %705 = vmatpush.bf16.msrb.mxu3 %v1208_v15  ;;  %620 = vmatpush.bf16.msrb.mxu0 %v1203_v14 }
  0x4a   : > { %639 = vmatpush.bf16.msrb.mxu1 %v1208_v15 }
  0x4b   : > { %687 = vmatmul.bf16.vlgmr.msrb.gmra.mxu2 %v967_v50 }
  0x4c   : > { %621 = vmatmul.bf16.vlgmr.msrb.gmra.mxu0 %v951_v48 }
  0x4d   : > { %640 = vmatmul.bf16.vlgmr.msrb.gmra.mxu1 %v955_v49 }
  0x4e   : > { %706 = vmatmul.bf16.vlgmr.msrb.gmra.mxu3 %v971_v51 }
  0x5b   : > { %692 = vmatmul.bf16.gmra.mxu2 %v975_v62 }
  0x5c   : > { %626 = vmatmul.bf16.gmra.mxu0 %v959_v60 }
  0x5d   : > { %645 = vmatmul.bf16.gmra.mxu1 %v963_v61 }
  0x5e   : > { %711 = vmatmul.bf16.gmra.mxu3 %v979_v63 }
  0xa8   : > { %v494_v0 = vpop.f32.mrf.mxu0 }
  0xa9   : > { %v513_v1 = vpop.f32.mrf.mxu1 }
  0xaa   : > { %v514_v21 = vadd.f32 %v513_v1, %v494_v0 }
  0xae   : > { %v556_v2 = vpop.f32.mrf.mxu2 }
  0xb0   : > { %v496_v4 = vpop.f32.mrf.mxu0 }
  0xb1   : > { %v575_v3 = vpop.f32.mrf.mxu3  ;;  %v515_v5 = vpop.f32.mrf.mxu1 }
  0xb2   : > { %v576_v18 = vadd.f32 %v575_v3, %v556_v2  ;;  %v516_v28 = vadd.f32 %v515_v5, %v496_v4 }
  0xb4   : > { %v585_v25 = vmax.f32 %v514_v21, %v576_v18 }
  0xb6   : > { %v558_v6 = vpop.f32.mrf.mxu2 }
  0xb8   : > { %v499_v8 = vpop.f32.mrf.mxu0 }
  0xb9   : > { %v577_v7 = vpop.f32.mrf.mxu3  ;;  %v518_v9 = vpop.f32.mrf.mxu1 }
  0xba   : > { %v578_v26 = vadd.f32 %v577_v7, %v558_v6  ;;  %v519_v48 = vadd.f32 %v518_v9, %v499_v8 }
  0xbc   : > { %v586_v31 = vmax.f32 %v516_v28, %v578_v26 }
  0xbe   : > { %v561_v10 = vpop.f32.mrf.mxu2 }
  0xc0   : > { %v501_v12 = vpop.f32.mrf.mxu0 }
  0xc1   : > { %v580_v11 = vpop.f32.mrf.mxu3  ;;  %v520_v13 = vpop.f32.mrf.mxu1 }
  0xc2   : > { %v581_v43 = vadd.f32 %v580_v11, %v561_v10  ;;  %v521_v56 = vadd.f32 %v520_v13, %v501_v12 }
  0xc4   : > { %v587_v53 = vmax.f32 %v519_v48, %v581_v43 }
  0xc6   : > { %v563_v14 = vpop.f32.mrf.mxu2 }
  0xc9   : > { %v582_v15 = vpop.f32.mrf.mxu3  ;;  %v622_v16 = vpop.f32.mrf.mxu0 }
  0xca   : > { %v641_v17 = vpop.f32.mrf.mxu1  ;;  %v583_v54 = vadd.f32 %v582_v15, %v563_v14 }
  0xcb   : > { %v642_v22 = vadd.f32 %v641_v17, %v622_v16 }
  0xcc   : > { %v588_v59 = vmax.f32 %v521_v56, %v583_v54 }
  0xcd   : > { %v651_v29 = vmax.f32 %v585_v25, %v642_v22 }
  0xce   : > { %v688_v19 = vpop.f32.mrf.mxu2 }
  0xd1   : > { %v707_v20 = vpop.f32.mrf.mxu3  ;;  %v624_v23 = vpop.f32.mrf.mxu0 }
  0xd2   : > { %v643_v24 = vpop.f32.mrf.mxu1  ;;  %v708_v27 = vadd.f32 %v707_v20, %v688_v19 }
  0xd3   : > { %v644_v30 = vadd.f32 %v643_v24, %v624_v23 }
  0xd4   : > { %v717_v32 = vmax.f32 %v651_v29, %v708_v27 }
  0xd5   : > { %v652_v36 = vmax.f32 %v586_v31, %v644_v30 }
  0xd6   : > { %v690_v34 = vpop.f32.mrf.mxu2  ;;  %v725_v40 = vadd.f32 %v1037_v33, %v717_v32 }
  0xd8   : > { %v729_v44 = vmax.f32 %v725_v40, 0.0 }
  0xd9   : > { %v709_v35 = vpop.f32.mrf.mxu3  ;;  %v627_v38 = vpop.f32.mrf.mxu0 }
  0xda   : > { %v710_v37 = vadd.f32 %v709_v35, %v690_v34  ;;  %v646_v39 = vpop.f32.mrf.mxu1 }
  0xdb   : > { %v647_v50 = vadd.f32 %v646_v39, %v627_v38 }
  0xdc   : > { %v718_v41 = vmax.f32 %v652_v36, %v710_v37 }
  0xdd   : > { %v653_v57 = vmax.f32 %v587_v53, %v647_v50 }
  0xde   : > { %v726_v42 = vadd.f32 %v1037_v33, %v718_v41  ;;  %v693_v46 = vpop.f32.mrf.mxu2 }
  0xe0   : > { %v730_v45 = vmax.f32 %v726_v42, 0.0 }
  0xe1   : > { %v712_v47 = vpop.f32.mrf.mxu3  ;;  %v629_v51 = vpop.f32.mrf.mxu0 }
  0xe2   : > { %v1021_v49 = vpack.c.bf16 %v730_v45, %v729_v44  ;;  %v648_v52 = vpop.f32.mrf.mxu1  ;;  %v713_v55 = vadd.f32 %v712_v47, %v693_v46 }
  0xe3   : > { %v649_v58 = vadd.f32 %v648_v52, %v629_v51 }
  0xe4   : > { %1022 = vst [vmem:[%s331_s29] sm:$0xff] %v1021_v49   ;;  %v719_v60 = vmax.f32 %v653_v57, %v713_v55 }
  0xe5   : > { %v654_v63 = vmax.f32 %v588_v59, %v649_v58 }
  0xe6   : > { %v695_v61 = vpop.f32.mrf.mxu2  ;;  %v727_v1 = vadd.f32 %v1037_v33, %v719_v60 }
  0xe8   : > { %v731_v4 = vmax.f32 %v727_v1, 0.0 }
  0xe9   : > { %v714_v62 = vpop.f32.mrf.mxu3 }
  0xea   : > { %v715_v0 = vadd.f32 %v714_v62, %v695_v61 }
  0xec   : > { %v720_v2 = vmax.f32 %v654_v63, %v715_v0 }
  0xee   : > { %v728_v3 = vadd.f32 %v1037_v33, %v720_v2 }
  0xf0   : > { %v732_v5 = vmax.f32 %v728_v3, 0.0 }
  0xf2   : > { %v1026_v6 = vpack.c.bf16 %v732_v5, %v731_v4 }
  0xf4   : > { %1028 = vst [vmem:[%s331_s29 + $0x8] sm:$0xff] %v1026_v6  }
  0xf5 PF: > { %s16_s21 = sadd.s32 1, %s1044_s21  }
  0xf6   : > { %p13_p4 = scmp.ge.s32.totalorder %s16_s21, 4  }
  0xf8   :  { %15 = sbr.rel (!%p13_p4) target bundleno = 1 (0x1), region = 83 }

// kernel: cnn_forward.5
= control target key start
LH: loop header
LB: loop body
LE: loop exit
PB: predicated region body
PF: predicated region fallthrough
CT: control target
= control target key end

     0   :  { %s1028_s1 = inlined_call_operand.vmem [shape: bf16[512,128], index: 1, kind: input, shape index: {}]   ;;  %s1029_s2 = inlined_call_operand.vmem [shape: f32[1,128], index: 2, kind: input, shape index: {}]   ;;  %s1030_s0 = inlined_call_operand.vmem [shape: bf16[16,512], index: 0, kind: input, shape index: {}]   ;;  %s1031_s3 = inlined_call_operand.vmem [shape: bf16[128,128], index: 3, kind: input, shape index: {}]   ;;  %s1032_s4 = inlined_call_operand.vmem [shape: f32[1,128], index: 4, kind: input, shape index: {}]   ;;  %s1033_s5 = inlined_call_operand.vmem [shape: bf16[128,128], index: 5, kind: input, shape index: {}]   ;;  %s1034_s6 = inlined_call_operand.vmem [shape: f32[1,128], index: 6, kind: input, shape index: {}]   ;;  %s1035_s7 = inlined_call_operand.vmem [shape: f32[16,128], index: 7, kind: output, shape index: {}]  }
   0x1   :  { %v761_v0 = vld [vmem:[%s1028_s1 + $0x38] sm:$0xff]  ;;  %v760_v4 = vld [vmem:[%s1028_s1 + $0x30] sm:$0xff]  ;;  %v759_v8 = vld [vmem:[%s1028_s1 + $0x28] sm:$0xff] }
   0x2   :  { %v769_v1 = vld [vmem:[%s1028_s1 + $0x78] sm:$0xff]  ;;  %310 = vmatpush.bf16.msra.mxu0 %v761_v0  ;;  %v768_v5 = vld [vmem:[%s1028_s1 + $0x70] sm:$0xff]  ;;  %v767_v9 = vld [vmem:[%s1028_s1 + $0x68] sm:$0xff] }
   0x3   :  { %v777_v2 = vld [vmem:[%s1028_s1 + $0xb8] sm:$0xff]  ;;  %324 = vmatpush.bf16.msra.mxu1 %v769_v1  ;;  %v776_v6 = vld [vmem:[%s1028_s1 + $0xb0] sm:$0xff]  ;;  %v775_v10 = vld [vmem:[%s1028_s1 + $0xa8] sm:$0xff] }
   0x4   :  { %v785_v3 = vld [vmem:[%s1028_s1 + $0xf8] sm:$0xff]  ;;  %338 = vmatpush.bf16.msra.mxu2 %v777_v2  ;;  %v784_v7 = vld [vmem:[%s1028_s1 + $0xf0] sm:$0xff]  ;;  %v783_v11 = vld [vmem:[%s1028_s1 + $0xe8] sm:$0xff] }
   0x5   :  { %352 = vmatpush.bf16.msra.mxu3 %v785_v3  ;;  %v758_v12 = vld [vmem:[%s1028_s1 + $0x20] sm:$0xff]  ;;  %v757_v16 = vld [vmem:[%s1028_s1 + $0x18] sm:$0xff]  ;;  %v756_v20 = vld [vmem:[%s1028_s1 + $0x10] sm:$0xff] }
   0x6   :  { %311 = vmatpush.bf16.msra.mxu0 %v760_v4  ;;  %v766_v13 = vld [vmem:[%s1028_s1 + $0x60] sm:$0xff]  ;;  %v765_v17 = vld [vmem:[%s1028_s1 + $0x58] sm:$0xff]  ;;  %v764_v21 = vld [vmem:[%s1028_s1 + $0x50] sm:$0xff] }
   0x7   :  { %325 = vmatpush.bf16.msra.mxu1 %v768_v5  ;;  %v774_v14 = vld [vmem:[%s1028_s1 + $0xa0] sm:$0xff]  ;;  %v773_v18 = vld [vmem:[%s1028_s1 + $0x98] sm:$0xff]  ;;  %v772_v22 = vld [vmem:[%s1028_s1 + $0x90] sm:$0xff] }
   0x8   :  { %339 = vmatpush.bf16.msra.mxu2 %v776_v6  ;;  %v782_v15 = vld [vmem:[%s1028_s1 + $0xe0] sm:$0xff]  ;;  %v781_v19 = vld [vmem:[%s1028_s1 + $0xd8] sm:$0xff]  ;;  %v780_v23 = vld [vmem:[%s1028_s1 + $0xd0] sm:$0xff] }
   0x9   :  { %353 = vmatpush.bf16.msra.mxu3 %v784_v7  ;;  %v755_v24 = vld [vmem:[%s1028_s1 + $0x8] sm:$0xff]  ;;  %v754_v28 = vld [vmem:[%s1028_s1] sm:$0xff]  ;;  %v752_v33 = vld [vmem:[%s1030_s0 + $0xc] sm:$0xf0] }
   0xa   :  { %312 = vmatpush.bf16.msra.mxu0 %v759_v8  ;;  %v763_v25 = vld [vmem:[%s1028_s1 + $0x48] sm:$0xff]  ;;  %v762_v29 = vld [vmem:[%s1028_s1 + $0x40] sm:$0xff]  ;;  %v546_v35 = vld [vmem:[%s1030_s0 + $0x10] sm:$0xf0] }
   0xb   :  { %326 = vmatpush.bf16.msra.mxu1 %v767_v9  ;;  %v771_v26 = vld [vmem:[%s1028_s1 + $0x88] sm:$0xff]  ;;  %v770_v30 = vld [vmem:[%s1028_s1 + $0x80] sm:$0xff]  ;;  %v753_v37 = vld [vmem:[%s1030_s0 + $0x14] sm:$0xf0] }
   0xc   :  { %340 = vmatpush.bf16.msra.mxu2 %v775_v10  ;;  %v779_v27 = vld [vmem:[%s1028_s1 + $0xc8] sm:$0xff]  ;;  %v778_v31 = vld [vmem:[%s1028_s1 + $0xc0] sm:$0xff]  ;;  %v554_v39 = vld [vmem:[%s1030_s0 + $0x18] sm:$0xf0] }
   0xd   :  { %354 = vmatpush.bf16.msra.mxu3 %v783_v11  ;;  %v544_v32 = vld [vmem:[%s1030_s0] sm:$0xf]  ;;  %v750_v34 = vld [vmem:[%s1030_s0 + $0x4] sm:$0xf]  ;;  %v552_v36 = vld [vmem:[%s1030_s0 + $0x8] sm:$0xf] }
   0xe   :  { %313 = vmatpush.bf16.msra.mxu0 %v758_v12  ;;  %v751_v38 = vld [vmem:[%s1030_s0 + $0xc] sm:$0xf]  ;;  %v793_v40 = vld [vmem:[%s1031_s3 + $0x38] sm:$0xff]  ;;  %v545_v41 = vor.u32 %v752_v33, %v544_v32  ;;  %v549_v42 = vor.u32 %v750_v34, %v546_v35  ;;  %v553_v43 = vor.u32 %v753_v37, %v552_v36  ;;  %v792_v45 = vld [vmem:[%s1031_s3 + $0x30] sm:$0xff] }
   0xf   :  { %327 = vmatpush.bf16.msra.mxu1 %v766_v13  ;;  %v557_v44 = vor.u32 %v751_v38, %v554_v39  ;;  %v791_v46 = vld [vmem:[%s1031_s3 + $0x28] sm:$0xff]  ;;  %v790_v47 = vld [vmem:[%s1031_s3 + $0x20] sm:$0xff]  ;;  %v789_v48 = vld [vmem:[%s1031_s3 + $0x18] sm:$0xff] }
  0x10   :  { %341 = vmatpush.bf16.msra.mxu2 %v774_v14  ;;  %v788_v49 = vld [vmem:[%s1031_s3 + $0x10] sm:$0xff]  ;;  %v787_v50 = vld [vmem:[%s1031_s3 + $0x8] sm:$0xff]  ;;  %v786_v51 = vld [vmem:[%s1031_s3] sm:$0xff] }
  0x11   :  { %355 = vmatpush.bf16.msra.mxu3 %v782_v15  ;;  %v801_v52 = vld [vmem:[%s1033_s5 + $0x38] sm:$0xff]  ;;  %v800_v53 = vld [vmem:[%s1033_s5 + $0x30] sm:$0xff]  ;;  %v799_v54 = vld [vmem:[%s1033_s5 + $0x28] sm:$0xff] }
  0x12   :  { %314 = vmatpush.bf16.msra.mxu0 %v757_v16  ;;  %v802_v55 = vld [vmem:[%s1029_s2] ss:$0 sm:$0xff]  ;;  %v797_v12 = vld [vmem:[%s1033_s5 + $0x18] sm:$0xff]  ;;  %v796_v13 = vld [vmem:[%s1033_s5 + $0x10] sm:$0xff] }
  0x13   :  { %328 = vmatpush.bf16.msra.mxu1 %v765_v17  ;;  %v798_v57 = vld [vmem:[%s1033_s5 + $0x20] sm:$0xff]  ;;  %v795_v14 = vld [vmem:[%s1033_s5 + $0x8] sm:$0xff] }
  0x14   :  { %342 = vmatpush.bf16.msra.mxu2 %v773_v18  ;;  %v794_v15 = vld [vmem:[%s1033_s5] sm:$0xff] }
  0x15   :  { %356 = vmatpush.bf16.msra.mxu3 %v781_v19  ;;  %v803_v17 = vld [vmem:[%s1032_s4] ss:$0 sm:$0xff] }
  0x16   :  { %315 = vmatpush.bf16.msra.mxu0 %v756_v20 }
  0x17   :  { %329 = vmatpush.bf16.msra.mxu1 %v764_v21 }
  0x18   :  { %343 = vmatpush.bf16.msra.mxu2 %v772_v22 }
  0x19   :  { %357 = vmatpush.bf16.msra.mxu3 %v780_v23 }
  0x1a   :  { %316 = vmatpush.bf16.msra.mxu0 %v755_v24  ;;  %v804_v24 = vld [vmem:[%s1034_s6] ss:$0 sm:$0xff] }
  0x1b   :  { %330 = vmatpush.bf16.msra.mxu1 %v763_v25 }
  0x1c   :  { %344 = vmatpush.bf16.msra.mxu2 %v771_v26 }
  0x1d   :  { %358 = vmatpush.bf16.msra.mxu3 %v779_v27 }
  0x1e   :  { %317 = vmatpush.bf16.msra.mxu0 %v754_v28 }
  0x1f   :  { %331 = vmatpush.bf16.msra.mxu1 %v762_v29 }
  0x20   :  { %345 = vmatpush.bf16.msra.mxu2 %v770_v30 }
  0x21   :  { %359 = vmatpush.bf16.msra.mxu3 %v778_v31  ;;  %318 = vmatmul.bf16.vlgmr.msra.gmra.mxu0 %v545_v41 }
  0x22   :  { %437 = vmatpush.bf16.msrb.mxu0 %v793_v40  ;;  %332 = vmatmul.bf16.vlgmr.msra.gmra.mxu1 %v549_v42 }
  0x23   :  { %346 = vmatmul.bf16.vlgmr.msra.gmra.mxu2 %v553_v43  ;;  %522 = vmatpush.bf16.msrb.mxu1 %v801_v52 }
  0x24   :  { %360 = vmatmul.bf16.vlgmr.msra.gmra.mxu3 %v557_v44 }
  0x26   :  { %438 = vmatpush.bf16.msrb.mxu0 %v792_v45 }
  0x27   :  { %523 = vmatpush.bf16.msrb.mxu1 %v800_v53 }
  0x2a   :  { %439 = vmatpush.bf16.msrb.mxu0 %v791_v46 }
  0x2b   :  { %524 = vmatpush.bf16.msrb.mxu1 %v799_v54 }
  0x2e   :  { %440 = vmatpush.bf16.msrb.mxu0 %v790_v47 }
  0x2f   :  { %525 = vmatpush.bf16.msrb.mxu1 %v798_v57 }
  0x32   :  { %441 = vmatpush.bf16.msrb.mxu0 %v789_v48 }
  0x33   :  { %526 = vmatpush.bf16.msrb.mxu1 %v797_v12 }
  0x36   :  { %442 = vmatpush.bf16.msrb.mxu0 %v788_v49 }
  0x37   :  { %527 = vmatpush.bf16.msrb.mxu1 %v796_v13 }
  0x3a   :  { %443 = vmatpush.bf16.msrb.mxu0 %v787_v50 }
  0x3b   :  { %528 = vmatpush.bf16.msrb.mxu1 %v795_v14 }
  0x3e   :  { %444 = vmatpush.bf16.msrb.mxu0 %v786_v51 }
  0x3f   :  { %529 = vmatpush.bf16.msrb.mxu1 %v794_v15 }
  0x9e   :  { %v319_v56 = vpop.f32.mrf.mxu0 }
  0x9f   :  { %v333_v58 = vpop.f32.mrf.mxu1  ;;  %v320_v59 = vadd.f32 %v802_v55, %v319_v56 }
  0xa1   :  { %v334_v62 = vadd.f32 %v333_v58, %v320_v59 }
  0xa6   :  { %v347_v60 = vpop.f32.mrf.mxu2  ;;  %v321_v63 = vpop.f32.mrf.mxu0 }
  0xa7   :  { %v361_v61 = vpop.f32.mrf.mxu3  ;;  %v322_v0 = vadd.f32 %v802_v55, %v321_v63  ;;  %v348_v1 = vadd.f32 %v347_v60, %v334_v62  ;;  %v335_v2 = vpop.f32.mrf.mxu1 }
  0xa9   :  { %v336_v3 = vadd.f32 %v335_v2, %v322_v0  ;;  %v362_v5 = vadd.f32 %v361_v61, %v348_v1 }
  0xab   :  { %v366_v9 = vmax.f32 %v362_v5, 0.0 }
  0xae   :  { %v349_v4 = vpop.f32.mrf.mxu2 }
  0xaf   :  { %v350_v6 = vadd.f32 %v349_v4, %v336_v3  ;;  %v363_v7 = vpop.f32.mrf.mxu3 }
  0xb1   :  { %v364_v8 = vadd.f32 %v363_v7, %v350_v6 }
  0xb3   :  { %v367_v10 = vmax.f32 %v364_v8, 0.0 }
  0xb5   :  { %v368_v11 = vpack.c.bf16 %v367_v10, %v366_v9 }
  0xb7   :  { %445 = vmatmul.bf16.vlgmr.msrb.gmra.mxu0 %v368_v11 }
 0x134   :  { %v446_v16 = vpop.f32.mrf.mxu0 }
 0x135   :  { %v447_v18 = vadd.f32 %v803_v17, %v446_v16 }
 0x137   :  { %v451_v21 = vmax.f32 %v447_v18, 0.0 }
 0x13c   :  { %v448_v19 = vpop.f32.mrf.mxu0 }
 0x13d   :  { %v449_v20 = vadd.f32 %v803_v17, %v448_v19 }
 0x13f   :  { %v452_v22 = vmax.f32 %v449_v20, 0.0 }
 0x141   :  { %v453_v23 = vpack.c.bf16 %v452_v22, %v451_v21 }
 0x143   :  { %530 = vmatmul.bf16.vlgmr.msrb.gmra.mxu1 %v453_v23 }
 0x1c0   :  { %v531_v25 = vpop.f32.mrf.mxu1 }
 0x1c1   :  { %v532_v26 = vadd.f32 %v804_v24, %v531_v25 }
 0x1c3   :  { %536 = vst [vmem:[%s1035_s7] sm:$0xff] %v532_v26 }
 0x1c8   :  { %v533_v27 = vpop.f32.mrf.mxu1 }
 0x1c9   :  { %v534_v28 = vadd.f32 %v804_v24, %v533_v27 }
 0x1cb   :  { %537 = vst [vmem:[%s1035_s7 + $0x8] sm:$0xff] %v534_v28 }

</bundles_post_ra>
